<compile_context>
chip_gen: v7x
topology: tpu7x:2x2x1
jax: 0.10.0
libtpu: 0.0.40
codegen_flags: <defaults>
</compile_context>

<pallas_src>
import jax
import jax.numpy as jnp
from jax.experimental import pallas as pl
from jax.experimental.pallas import tpu as pltpu


# ----------------------------------------------------------------------------
# Small helpers
# ----------------------------------------------------------------------------
def _round_up(x, m):
    return ((x + m - 1) // m) * m


def _choose_tiles(m128, k_total, in_bytes, cout_total, out_bytes):
    """Pick (tm, m_pad): lane-dense, >=2 grid steps when possible, VMEM-budgeted.

    Budget is conservative (12 MiB) so tiles fit v5e's 16 MiB scoped-VMEM default
    without an explicit limit; bigger calls raise vmem_limit_bytes separately.
    """
    if m128 <= 128:
        return m128, m128
    budget = 12 * 1024 * 1024
    # At least 2 grid steps so v7x's second TensorCore gets work; cap at 512
    # (measured ~85% of HBM roofline at tile 512 vs ~63% at 256).
    tm = min(512, max(128, _round_up(m128 // 2, 128)))

    def need(t):
        return (2 * k_total * t * in_bytes        # double-buffered activation tiles
                + 2 * cout_total * k_total * in_bytes   # weights
                + 2 * cout_total * t * out_bytes        # double-buffered output tiles
                + 4 * cout_total * t)                   # f32 epilogue temp

    while tm > 128 and need(tm) > budget:
        tm -= 128
    return tm, _round_up(m128, tm)


def _mosaic_params(est_bytes):
    vmem_limit = None
    if est_bytes > 16 * 1024 * 1024:      # beyond v5e's scoped default
        vmem_limit = int(min(_round_up(est_bytes + (4 << 20), 1 << 20),
                             64 * 1024 * 1024))          # v7x physical ceiling
    return pltpu.CompilerParams(dimension_semantics=("parallel",),
                                vmem_limit_bytes=vmem_limit)


# ----------------------------------------------------------------------------
# Pallas kernels (all lane-dense in M, f32 epilogues)
# ----------------------------------------------------------------------------
def _make_convT_kernel(relu):
    def kernel(w_ref, x_ref, b_ref, o_ref):
        acc = jnp.dot(w_ref[...], x_ref[...], preferred_element_type=jnp.float32)
        acc = acc + b_ref[...]
        if relu:
            acc = jnp.maximum(acc, 0.0)
        o_ref[...] = acc.astype(o_ref.dtype)
    return kernel


def _aspp_fused_kernel(w1_ref, x1_ref, b1_ref, w2_ref, x2_ref, b2_ref,
                       w3_ref, x3_ref, b3_ref, wp1_ref, wp2_ref, wp3_ref,
                       pool_ref, o_ref):
    """3 ASPP conv branches + pooled-branch term + 1x1 projection + ReLU."""
    f32 = jnp.float32
    h1 = jnp.maximum(jnp.dot(w1_ref[...], x1_ref[...], preferred_element_type=f32)
                     + b1_ref[...], 0.0)
    h2 = jnp.maximum(jnp.dot(w2_ref[...], x2_ref[...], preferred_element_type=f32)
                     + b2_ref[...], 0.0)
    h3 = jnp.maximum(jnp.dot(w3_ref[...], x3_ref[...], preferred_element_type=f32)
                     + b3_ref[...], 0.0)
    acc = pool_ref[...]      # precomputed Wproj_pool @ relu(pool) + b_proj  (f32)
    acc = acc + jnp.dot(wp1_ref[...], h1.astype(jnp.bfloat16),
                        preferred_element_type=f32)
    acc = acc + jnp.dot(wp2_ref[...], h2.astype(jnp.bfloat16),
                        preferred_element_type=f32)
    acc = acc + jnp.dot(wp3_ref[...], h3.astype(jnp.bfloat16),
                        preferred_element_type=f32)
    o_ref[...] = jnp.maximum(acc, 0.0).astype(o_ref.dtype)


def _heads_fused_kernel(w_ho_ref, xo_ref, b_ho_ref, w_co_ref, b_co_ref,
                        w_ha_ref, xa_ref, b_ha_ref, w_ca_ref, b_ca_ref, o_ref):
    """DeepLabHead tail (3x3 conv + 1x1 cls) and FCNHead, stacked-logits output."""
    f32 = jnp.float32
    c_pad = w_co_ref.shape[0]
    h_o = jnp.maximum(jnp.dot(w_ho_ref[...], xo_ref[...], preferred_element_type=f32)
                      + b_ho_ref[...], 0.0)
    lo = jnp.dot(w_co_ref[...], h_o.astype(jnp.bfloat16),
                 preferred_element_type=f32) + b_co_ref[...]
    h_a = jnp.maximum(jnp.dot(w_ha_ref[...], xa_ref[...], preferred_element_type=f32)
                      + b_ha_ref[...], 0.0)
    la = jnp.dot(w_ca_ref[...], h_a.astype(jnp.bfloat16),
                 preferred_element_type=f32) + b_ca_ref[...]
    o_ref[0:c_pad, :] = lo.astype(o_ref.dtype)
    o_ref[c_pad:2 * c_pad, :] = la.astype(o_ref.dtype)


# ----------------------------------------------------------------------------
# Generic transposed conv matmul
# ----------------------------------------------------------------------------
def pallas_convT(xt, w_t, b, relu=False, out_dtype=jnp.bfloat16,
                 compute_dtype=jnp.bfloat16):
    """O^T = relu?(w_t @ xt + b).  xt:(K,M), w_t:(Cout,K), b:(Cout,) -> (Cout,M)."""
    K, M = xt.shape
    cout = w_t.shape[0]
    in_bytes = jnp.dtype(compute_dtype).itemsize
    out_bytes = jnp.dtype(out_dtype).itemsize
    k_align = 16 if in_bytes == 2 else 8
    k_pad = _round_up(K, k_align)
    m128 = _round_up(M, 128)
    tm, m_pad = _choose_tiles(m128, k_pad, in_bytes, cout, out_bytes)

    # Cast BEFORE padding so the glue copies move narrow data.
    xt_p = jnp.pad(xt.astype(compute_dtype), ((0, k_pad - K), (0, m_pad - M)))
    w_p = jnp.pad(w_t.astype(compute_dtype), ((0, 0), (0, k_pad - K)))
    est = (2 * k_pad * tm * in_bytes + 2 * cout * k_pad * in_bytes
           + 2 * cout * tm * out_bytes + 4 * cout * tm)

    out = pl.pallas_call(
        _make_convT_kernel(relu),
        out_shape=jax.ShapeDtypeStruct((cout, m_pad), out_dtype),
        grid_spec=pltpu.PrefetchScalarGridSpec(
            num_scalar_prefetch=0,
            grid=(m_pad // tm,),
            in_specs=[
                pl.BlockSpec((cout, k_pad), lambda i: (0, 0)),   # full weight (tiny)
                pl.BlockSpec((k_pad, tm), lambda i: (0, i)),     # activation tile
                pl.BlockSpec((cout, 1), lambda i: (0, 0)),       # bias column (f32)
            ],
            out_specs=pl.BlockSpec((cout, tm), lambda i: (0, i)),
        ),
        compiler_params=_mosaic_params(est),
    )(w_p, xt_p, b.reshape(cout, 1).astype(jnp.float32))
    return out[:, :M]


# ----------------------------------------------------------------------------
# im2col glue (bf16) + conv wrapper
# ----------------------------------------------------------------------------
def _im2colT(x, kh, kw, stride, padding, dilation):
    """x: (C, N, H, W) -> X^T: (kh*kw*C, N*Ho*Wo), taps major / channels minor."""
    c, n, h, w = x.shape
    xp = jnp.pad(x, ((0, 0), (0, 0), (padding, padding), (padding, padding)))
    hp, wp = h + 2 * padding, w + 2 * padding
    ho = (hp - dilation * (kh - 1) - 1) // stride + 1
    wo = (wp - dilation * (kw - 1) - 1) // stride + 1
    taps = []
    for i in range(kh):
        for j in range(kw):
            hs, ws = i * dilation, j * dilation
            win = xp[:, :, hs:hs + (ho - 1) * stride + 1:stride,
                           ws:ws + (wo - 1) * stride + 1:stride]
            taps.append(win.reshape(c, n * ho * wo))
    # TODO(synk): at production sizes this kh*kw replication must move in-kernel
    # (grid axis over taps + f32 accumulator) to cut activation HBM traffic ~9x.
    return jnp.concatenate(taps, axis=0), ho, wo


def conv2d(x, w, b, stride=1, padding=0, dilation=1, relu=False,
           out_dtype=jnp.bfloat16):
    """x: (C, N, H, W); w: (Cout, Cin, kh, kw) PyTorch layout; b: (Cout,)."""
    cout, cin, kh, kw = w.shape
    n = x.shape[1]
    xt, ho, wo = _im2colT(x, kh, kw, stride, padding, dilation)
    w_t = jnp.transpose(w, (0, 2, 3, 1)).reshape(cout, kh * kw * cin)
    o = pallas_convT(xt, w_t, b, relu=relu, out_dtype=out_dtype)
    return o.reshape(cout, n, ho, wo)


# ----------------------------------------------------------------------------
# Fused ASPP (3 branches + pooling contribution + projection) — one pallas_call
# ----------------------------------------------------------------------------
def aspp_fused(out_feat, p1, p2, p3, p_pool, p_proj, out_dtype=jnp.bfloat16):
    cf, n, hf, wf = out_feat.shape
    w1, b1 = p1
    w2, b2 = p2
    w3, b3 = p3
    wpool, bpool = p_pool
    wproj, bproj = p_proj
    c_b = w1.shape[0]
    c_p = wproj.shape[0]

    xt1, _, _ = _im2colT(out_feat, 1, 1, 1, 0, 1)        # (cf,   M) bf16
    xt2, _, _ = _im2colT(out_feat, 3, 3, 1, 2, 2)        # (9*cf, M) bf16
    xt3, _, _ = _im2colT(out_feat, 3, 3, 1, 4, 4)        # (9*cf, M) bf16
    M = xt1.shape[1]
    k1, k2, k3 = xt1.shape[0], xt2.shape[0], xt3.shape[0]

    w1_t = w1.reshape(c_b, cf).astype(jnp.bfloat16)
    w2_t = jnp.transpose(w2, (0, 2, 3, 1)).reshape(c_b, k2).astype(jnp.bfloat16)
    w3_t = jnp.transpose(w3, (0, 2, 3, 1)).reshape(c_b, k3).astype(jnp.bfloat16)
    wproj_m = wproj.reshape(c_p, 4 * c_b)
    wp1 = wproj_m[:, :c_b].astype(jnp.bfloat16)
    wp2 = wproj_m[:, c_b:2 * c_b].astype(jnp.bfloat16)
    wp3 = wproj_m[:, 2 * c_b:3 * c_b].astype(jnp.bfloat16)
    wp4 = wproj_m[:, 3 * c_b:]                           # pooled-branch slice (f32)

    # Image-pooling branch + its projection contribution: an (N x C)-sized op,
    # deliberately plain XLA (a pallas_call here would be pure launch overhead).
    pooled = jnp.mean(out_feat.astype(jnp.float32), axis=(2, 3))           # (cf, N)
    pooled = jnp.maximum(jnp.dot(wpool.reshape(c_b, cf), pooled)
                         + bpool[:, None], 0.0)                            # (c_b, N)
    pool_add = jnp.dot(wp4, pooled) + bproj[:, None]                       # (c_p, N)
    pool_add = jnp.broadcast_to(pool_add[:, :, None],
                                (c_p, n, hf * wf)).reshape(c_p, M)

    m128 = _round_up(M, 128)
    tm, m_pad = _choose_tiles(m128, k1 + k2 + k3 + c_p, 2, 3 * c_b + c_p, 2)
    pad_m = lambda a: jnp.pad(a, ((0, 0), (0, m_pad - M)))
    est = 2 * (k1 + k2 + k3) * tm * 2 + 2 * c_p * tm * 4 + (1 << 20)

    out = pl.pallas_call(
        _aspp_fused_kernel,
        out_shape=jax.ShapeDtypeStruct((c_p, m_pad), out_dtype),
        grid_spec=pltpu.PrefetchScalarGridSpec(
            num_scalar_prefetch=0,
            grid=(m_pad // tm,),
            in_specs=[
                pl.BlockSpec((c_b, k1), lambda i: (0, 0)),
                pl.BlockSpec((k1, tm), lambda i: (0, i)),
                pl.BlockSpec((c_b, 1), lambda i: (0, 0)),
                pl.BlockSpec((c_b, k2), lambda i: (0, 0)),
                pl.BlockSpec((k2, tm), lambda i: (0, i)),
                pl.BlockSpec((c_b, 1), lambda i: (0, 0)),
                pl.BlockSpec((c_b, k3), lambda i: (0, 0)),
                pl.BlockSpec((k3, tm), lambda i: (0, i)),
                pl.BlockSpec((c_b, 1), lambda i: (0, 0)),
                pl.BlockSpec((c_p, c_b), lambda i: (0, 0)),
                pl.BlockSpec((c_p, c_b), lambda i: (0, 0)),
                pl.BlockSpec((c_p, c_b), lambda i: (0, 0)),
                pl.BlockSpec((c_p, tm), lambda i: (0, i)),
            ],
            out_specs=pl.BlockSpec((c_p, tm), lambda i: (0, i)),
        ),
        compiler_params=_mosaic_params(est),
    )(w1_t, pad_m(xt1), b1.reshape(c_b, 1).astype(jnp.float32),
      w2_t, pad_m(xt2), b2.reshape(c_b, 1).astype(jnp.float32),
      w3_t, pad_m(xt3), b3.reshape(c_b, 1).astype(jnp.float32),
      wp1, wp2, wp3, pad_m(pool_add.astype(jnp.float32)))
    return out[:, :M].reshape(c_p, n, hf, wf)


# ----------------------------------------------------------------------------
# Fused heads (DeepLabHead tail + FCNHead) -> class-padded stacked logits (f32)
# ----------------------------------------------------------------------------
def heads_fused(proj_feat, aux_feat, p_head_conv, p_head_cls,
                p_aux_conv, p_aux_cls, num_classes):
    c_o, n, hf, wf = proj_feat.shape
    assert aux_feat.shape[1:] == proj_feat.shape[1:], "heads expect matching M"
    w_hc, b_hc = p_head_conv
    w_cls, b_cls = p_head_cls
    w_ac, b_ac = p_aux_conv
    w_acls, b_acls = p_aux_cls
    c_h, c_a = w_hc.shape[0], w_ac.shape[0]
    c_pad = _round_up(num_classes, 8)      # pad classes 5 -> 8 (sliced after upsample)

    xt_o, ho_, wo_ = _im2colT(proj_feat, 3, 3, 1, 1, 1)
    xt_a, _, _ = _im2colT(aux_feat, 3, 3, 1, 1, 1)
    M = xt_o.shape[1]
    ko, ka = xt_o.shape[0], xt_a.shape[0]

    w_ho = jnp.transpose(w_hc, (0, 2, 3, 1)).reshape(c_h, ko).astype(jnp.bfloat16)
    w_ha = jnp.transpose(w_ac, (0, 2, 3, 1)).reshape(c_a, ka).astype(jnp.bfloat16)
    w_co = jnp.pad(w_cls.reshape(num_classes, c_h),
                   ((0, c_pad - num_classes), (0, 0))).astype(jnp.bfloat16)
    b_co = jnp.pad(b_cls, (0, c_pad - num_classes))
    w_ca = jnp.pad(w_acls.reshape(num_classes, c_a),
                   ((0, c_pad - num_classes), (0, 0))).astype(jnp.bfloat16)
    b_ca = jnp.pad(b_acls, (0, c_pad - num_classes))

    m128 = _round_up(M, 128)
    tm, m_pad = _choose_tiles(m128, ko + ka, 2, 2 * c_pad, 4)
    pad_m = lambda a: jnp.pad(a, ((0, 0), (0, m_pad - M)))
    est = 2 * (ko + ka) * tm * 2 + 2 * 2 * c_pad * tm * 4 + (1 << 20)

    out = pl.pallas_call(
        _heads_fused_kernel,
        out_shape=jax.ShapeDtypeStruct((2 * c_pad, m_pad), jnp.float32),
        grid_spec=pltpu.PrefetchScalarGridSpec(
            num_scalar_prefetch=0,
            grid=(m_pad // tm,),
            in_specs=[
                pl.BlockSpec((c_h, ko), lambda i: (0, 0)),
                pl.BlockSpec((ko, tm), lambda i: (0, i)),
                pl.BlockSpec((c_h, 1), lambda i: (0, 0)),
                pl.BlockSpec((c_pad, c_h), lambda i: (0, 0)),
                pl.BlockSpec((c_pad, 1), lambda i: (0, 0)),
                pl.BlockSpec((c_a, ka), lambda i: (0, 0)),
                pl.BlockSpec((ka, tm), lambda i: (0, i)),
                pl.BlockSpec((c_a, 1), lambda i: (0, 0)),
                pl.BlockSpec((c_pad, c_a), lambda i: (0, 0)),
                pl.BlockSpec((c_pad, 1), lambda i: (0, 0)),
            ],
            out_specs=pl.BlockSpec((2 * c_pad, tm), lambda i: (0, i)),
        ),
        compiler_params=_mosaic_params(est),
    )(w_ho, pad_m(xt_o), b_hc.reshape(c_h, 1).astype(jnp.float32),
      w_co, b_co.reshape(c_pad, 1).astype(jnp.float32),
      w_ha, pad_m(xt_a), b_ac.reshape(c_a, 1).astype(jnp.float32),
      w_ca, b_ca.reshape(c_pad, 1).astype(jnp.float32))
    return out[:, :M].reshape(2 * c_pad, n, ho_, wo_)


# ----------------------------------------------------------------------------
# Bilinear upsampling (align_corners=False), both heads in one call, f32
# ----------------------------------------------------------------------------
def _bilinear_matrix(out_size, in_size):
    scale = in_size / out_size
    i = jnp.arange(out_size, dtype=jnp.float32)
    src = jnp.maximum((i + 0.5) * scale - 0.5, 0.0)      # PyTorch clamp-to-0
    i0 = jnp.minimum(jnp.floor(src).astype(jnp.int32), in_size - 1)
    i1 = jnp.minimum(i0 + 1, in_size - 1)
    w1 = src - i0.astype(jnp.float32)
    w0 = 1.0 - w1
    a = jnp.zeros((out_size, in_size), jnp.float32)
    rows = jnp.arange(out_size)
    a = a.at[rows, i0].add(w0)
    a = a.at[rows, i1].add(w1)
    return a


def bilinear_upsample(x, out_h, out_w):
    """x: (C, N, H, W) f32 -> (C, N, out_h, out_w) f32; bilinear, align_corners=False."""
    c, n, h, w = x.shape
    ah = _bilinear_matrix(out_h, h)                      # (Ho, H)
    aw = _bilinear_matrix(out_w, w)                      # (Wo, W)
    # TODO(synk): at production output sizes (512^2) replace this combined,
    # >99%-sparse matrix with two separable matmuls (ah along H, aw along W).
    a = jnp.einsum('oh,pw->ophw', ah, aw).reshape(out_h * out_w, h * w)
    xflat = x.reshape(c * n, h * w).astype(jnp.float32)
    # Kept entirely in f32 so logits only round through bf16 once (review note).
    o = pallas_convT(a.T, xflat, jnp.zeros((c * n,), jnp.float32),
                     relu=False, out_dtype=jnp.float32, compute_dtype=jnp.float32)
    return o.reshape(c, n, out_h, out_w)


# ----------------------------------------------------------------------------
# Deterministic parameter init (BatchNorm folded into conv; eval mode)
# ----------------------------------------------------------------------------
def _init_conv_bn(key, cin, cout, k):
    k1, k2, k3, k4, k5 = jax.random.split(key, 5)
    w = jax.random.normal(k1, (cout, cin, k, k), jnp.float32) * 0.1
    gamma = 1.0 + 0.1 * jax.random.normal(k2, (cout,), jnp.float32)
    beta = 0.1 * jax.random.normal(k3, (cout,), jnp.float32)
    mean = 0.1 * jax.random.normal(k4, (cout,), jnp.float32)
    var = 1.0 + 0.1 * jax.random.uniform(k5, (cout,), jnp.float32)
    scale = gamma / jnp.sqrt(var + 1e-5)
    return w * scale[:, None, None, None], beta - mean * scale


def _init_conv_bias(key, cin, cout, k):
    k1, k2 = jax.random.split(key)
    w = jax.random.normal(k1, (cout, cin, k, k), jnp.float32) * 0.1
    b = 0.1 * jax.random.normal(k2, (cout,), jnp.float32)
    return w, b


def init_params(key, in_ch=3, num_classes=5):
    keys = jax.random.split(key, 16)
    p = {}
    # backbone (tiny ResNet-ish stack): /2, /2, /1 -> 'aux' and 'out' features
    p["b1"] = _init_conv_bn(keys[0], in_ch, 8, 3)
    p["b2"] = _init_conv_bn(keys[1], 8, 16, 3)           # -> features['aux']
    p["b3"] = _init_conv_bn(keys[2], 16, 32, 3)          # -> features['out']
    # classifier: DeepLabHead = ASPP + 3x3 conv + 1x1 classifier
    p["aspp1"] = _init_conv_bn(keys[3], 32, 16, 1)       # 1x1 branch
    p["aspp2"] = _init_conv_bn(keys[4], 32, 16, 3)       # atrous rate 2
    p["aspp3"] = _init_conv_bn(keys[5], 32, 16, 3)       # atrous rate 4
    p["aspp_pool"] = _init_conv_bn(keys[6], 32, 16, 1)   # image-pooling branch
    p["aspp_proj"] = _init_conv_bn(keys[7], 64, 16, 1)   # projection after concat
    p["head_conv"] = _init_conv_bn(keys[8], 16, 16, 3)
    p["head_cls"] = _init_conv_bias(keys[9], 16, num_classes, 1)
    # aux classifier: FCNHead
    p["aux_conv"] = _init_conv_bn(keys[10], 16, 8, 3)
    p["aux_cls"] = _init_conv_bias(keys[11], 8, num_classes, 1)
    return p


# ----------------------------------------------------------------------------
# DeepLabV3 forward
# ----------------------------------------------------------------------------
def deeplabv3_forward(x_nchw, params, num_classes=5):
    # PyTorch NCHW -> internal (C, N, H, W); glue runs in bf16, epilogues in f32.
    x = jnp.transpose(x_nchw, (1, 0, 2, 3)).astype(jnp.bfloat16)
    h_in, w_in = x.shape[2], x.shape[3]

    # ---- backbone ----
    f = conv2d(x, *params["b1"], stride=2, padding=1, relu=True)
    aux_feat = conv2d(f, *params["b2"], stride=2, padding=1, relu=True)   # 'aux'
    out_feat = conv2d(aux_feat, *params["b3"], stride=1, padding=1, relu=True)  # 'out'

    # ---- classifier: DeepLabHead = fully fused ASPP + fused head/aux heads ----
    proj = aspp_fused(out_feat, params["aspp1"], params["aspp2"], params["aspp3"],
                      params["aspp_pool"], params["aspp_proj"])
    # TODO(synk): nn.Dropout(0.5) inside ASPP/FCNHead is identity in eval mode; omitted.

    c_pad = _round_up(num_classes, 8)
    logits = heads_fused(proj, aux_feat, params["head_conv"], params["head_cls"],
                         params["aux_conv"], params["aux_cls"], num_classes)
    # One upsample call serves both heads (shared interpolation matrix), f32.
    up = bilinear_upsample(logits, h_in, w_in)           # (2*c_pad, N, H, W)

    out = jnp.transpose(up[:num_classes], (1, 0, 2, 3))
    aux = jnp.transpose(up[c_pad:c_pad + num_classes], (1, 0, 2, 3))
    return {"out": out, "aux": aux}                      # ordered: 'out' then 'aux'


if __name__ == "__main__":
    key = jax.random.PRNGKey(0)
    k_params, k_x = jax.random.split(key)
    num_classes = 5
    params = init_params(k_params, in_ch=3, num_classes=num_classes)

    x = jax.random.normal(k_x, (2, 3, 32, 32), jnp.float32)   # NCHW like PyTorch
    fwd = jax.jit(lambda xx, pp: deeplabv3_forward(xx, pp, num_classes))
    result = fwd(x, params)

    jax.block_until_ready(result["out"])
    jax.block_until_ready(result["aux"])

    assert result["out"].shape == (2, num_classes, 32, 32), result["out"].shape
    assert result["aux"].shape == (2, num_classes, 32, 32), result["aux"].shape
    assert bool(jnp.all(jnp.isfinite(result["out"])))
    assert bool(jnp.all(jnp.isfinite(result["aux"])))
    print("KERNEL_OK")
</pallas_src>

<mosaic_0001>
module attributes {stable_mosaic.version = 11 : i64} {
  func.func private @main(%arg0: i32) attributes {dimension_semantics = [#tpu.dimension_semantics<core_parallel>], iteration_bounds = array<i64: 2>, tpu.core_type = #tpu.core_type<sc_scalar_subcore>, window_params = []} {
    return
  }
}

module attributes {stable_mosaic.version = 11 : i64} {
  func.func private @main(%arg0: i32) attributes {dimension_semantics = [#tpu.dimension_semantics<core_parallel>], iteration_bounds = array<i64: 2>, tpu.core_type = #tpu.core_type<sc_scalar_subcore>, window_params = []} {
    return
  }
}

module attributes {stable_mosaic.version = 11 : i64} {
  func.func @kernel(%arg0: i32, %arg1: memref<8x32xbf16, #tpu.memory_space<vmem>>, %arg2: memref<32x256xbf16, #tpu.memory_space<vmem>>, %arg3: memref<8x1xf32, #tpu.memory_space<vmem>>, %arg4: memref<8x256xbf16, #tpu.memory_space<vmem>>) attributes {dimension_semantics = [#tpu.dimension_semantics<parallel>], iteration_bounds = array<i64: 2>, scalar_prefetch = 0 : i64, scratch_operands = 0 : i64, tpu.core_type = #tpu.core_type<tc>, window_params = [{pipeline_mode = #tpu.pipeline_mode<synchronous>, transform_indices = @transform_0, window_bounds = array<i64: 8, 32>}, {transform_indices = @transform_1, window_bounds = array<i64: 32, 256>}, {pipeline_mode = #tpu.pipeline_mode<synchronous>, transform_indices = @transform_2, window_bounds = array<i64: 8, 1>}, {transform_indices = @transform_3, window_bounds = array<i64: 8, 256>}]} {
    %c0 = arith.constant 0 : index
    %c0_0 = arith.constant 0 : index
    %0 = vector.load %arg1[%c0, %c0_0] : memref<8x32xbf16, #tpu.memory_space<vmem>>, vector<8x32xbf16>
    %c0_1 = arith.constant 0 : index
    %c0_2 = arith.constant 0 : index
    %1 = vector.load %arg2[%c0_1, %c0_2] : memref<32x256xbf16, #tpu.memory_space<vmem>>, vector<32x256xbf16>
    %cst = arith.constant dense<0.000000e+00> : vector<8x256xf32>
    %2 = tpu.matmul %0, %1, %cst {dimension_numbers = #tpu.dot_dimension_numbers<[1], [0], [0], [1], [0, 0, 1, 1], [], []>} : vector<8x32xbf16>, vector<32x256xbf16>, vector<8x256xf32> -> vector<8x256xf32>
    %c0_3 = arith.constant 0 : index
    %c0_4 = arith.constant 0 : index
    %3 = vector.load %arg3[%c0_3, %c0_4] : memref<8x1xf32, #tpu.memory_space<vmem>>, vector<8x1xf32>
    %4 = vector.broadcast %3 : vector<8x1xf32> to vector<8x256xf32>
    %5 = arith.addf %2, %4 : vector<8x256xf32>
    %cst_5 = arith.constant 0.000000e+00 : f32
    %6 = vector.broadcast %cst_5 : f32 to vector<8x256xf32>
    %7 = arith.maximumf %5, %6 : vector<8x256xf32>
    %8 = arith.truncf %7 : vector<8x256xf32> to vector<8x256xbf16>
    %c0_6 = arith.constant 0 : index
    %c0_7 = arith.constant 0 : index
    %9 = vector.load %arg4[%c0_6, %c0_7] : memref<8x256xbf16, #tpu.memory_space<vmem>>, vector<8x256xbf16>
    tpu.vector_store %arg4[%c0_6, %c0_7], %8 {strides = array<i32>} : memref<8x256xbf16, #tpu.memory_space<vmem>>, vector<8x256xbf16>,
    return
  }
  func.func @transform_0(%arg0: i32) -> (i32, i32) {
    %c0_i32 = arith.constant 0 : i32
    %c0_i32_0 = arith.constant 0 : i32
    %c0_i32_1 = arith.constant 0 : i32
    return %c0_i32, %c0_i32_0 : i32, i32
  }
  func.func @transform_1(%arg0: i32) -> (i32, i32) {
    %c0_i32 = arith.constant 0 : i32
    %c0_i32_0 = arith.constant 0 : i32
    return %c0_i32, %arg0 : i32, i32
  }
  func.func @transform_2(%arg0: i32) -> (i32, i32) {
    %c0_i32 = arith.constant 0 : i32
    %c0_i32_0 = arith.constant 0 : i32
    %c0_i32_1 = arith.constant 0 : i32
    return %c0_i32, %c0_i32_0 : i32, i32
  }
  func.func @transform_3(%arg0: i32) -> (i32, i32) {
    %c0_i32 = arith.constant 0 : i32
    %c0_i32_0 = arith.constant 0 : i32
    return %c0_i32, %arg0 : i32, i32
  }
}

module attributes {stable_mosaic.version = 11 : i64} {
  func.func @kernel(%arg0: i32, %arg1: memref<16x80xbf16, #tpu.memory_space<vmem>>, %arg2: memref<80x128xbf16, #tpu.memory_space<vmem>>, %arg3: memref<16x1xf32, #tpu.memory_space<vmem>>, %arg4: memref<16x128xbf16, #tpu.memory_space<vmem>>) attributes {dimension_semantics = [#tpu.dimension_semantics<parallel>], iteration_bounds = array<i64: 1>, scalar_prefetch = 0 : i64, scratch_operands = 0 : i64, tpu.core_type = #tpu.core_type<tc>, window_params = [{pipeline_mode = #tpu.pipeline_mode<synchronous>, transform_indices = @transform_0, window_bounds = array<i64: 16, 80>}, {transform_indices = @transform_1, window_bounds = array<i64: 80, 128>}, {pipeline_mode = #tpu.pipeline_mode<synchronous>, transform_indices = @transform_2, window_bounds = array<i64: 16, 1>}, {transform_indices = @transform_3, window_bounds = array<i64: 16, 128>}]} {
    %c0 = arith.constant 0 : index
    %c0_0 = arith.constant 0 : index
    %0 = vector.load %arg1[%c0, %c0_0] : memref<16x80xbf16, #tpu.memory_space<vmem>>, vector<16x80xbf16>
    %c0_1 = arith.constant 0 : index
    %c0_2 = arith.constant 0 : index
    %1 = vector.load %arg2[%c0_1, %c0_2] : memref<80x128xbf16, #tpu.memory_space<vmem>>, vector<80x128xbf16>
    %cst = arith.constant dense<0.000000e+00> : vector<16x128xf32>
    %2 = tpu.matmul %0, %1, %cst {dimension_numbers = #tpu.dot_dimension_numbers<[1], [0], [0], [1], [0, 0, 1, 1], [], []>} : vector<16x80xbf16>, vector<80x128xbf16>, vector<16x128xf32> -> vector<16x128xf32>
    %c0_3 = arith.constant 0 : index
    %c0_4 = arith.constant 0 : index
    %3 = vector.load %arg3[%c0_3, %c0_4] : memref<16x1xf32, #tpu.memory_space<vmem>>, vector<16x1xf32>
    %4 = vector.broadcast %3 : vector<16x1xf32> to vector<16x128xf32>
    %5 = arith.addf %2, %4 : vector<16x128xf32>
    %cst_5 = arith.constant 0.000000e+00 : f32
    %6 = vector.broadcast %cst_5 : f32 to vector<16x128xf32>
    %7 = arith.maximumf %5, %6 : vector<16x128xf32>
    %8 = arith.truncf %7 : vector<16x128xf32> to vector<16x128xbf16>
    %c0_6 = arith.constant 0 : index
    %c0_7 = arith.constant 0 : index
    %9 = vector.load %arg4[%c0_6, %c0_7] : memref<16x128xbf16, #tpu.memory_space<vmem>>, vector<16x128xbf16>
    tpu.vector_store %arg4[%c0_6, %c0_7], %8 {strides = array<i32>} : memref<16x128xbf16, #tpu.memory_space<vmem>>, vector<16x128xbf16>,
    return
  }
  func.func @transform_0(%arg0: i32) -> (i32, i32) {
    %c0_i32 = arith.constant 0 : i32
    %c0_i32_0 = arith.constant 0 : i32
    %c0_i32_1 = arith.constant 0 : i32
    return %c0_i32, %c0_i32_0 : i32, i32
  }
  func.func @transform_1(%arg0: i32) -> (i32, i32) {
    %c0_i32 = arith.constant 0 : i32
    %c0_i32_0 = arith.constant 0 : i32
    return %c0_i32, %arg0 : i32, i32
  }
  func.func @transform_2(%arg0: i32) -> (i32, i32) {
    %c0_i32 = arith.constant 0 : i32
    %c0_i32_0 = arith.constant 0 : i32
    %c0_i32_1 = arith.constant 0 : i32
    return %c0_i32, %c0_i32_0 : i32, i32
  }
  func.func @transform_3(%arg0: i32) -> (i32, i32) {
    %c0_i32 = arith.constant 0 : i32
    %c0_i32_0 = arith.constant 0 : i32
    return %c0_i32, %arg0 : i32, i32
  }
}

module attributes {stable_mosaic.version = 11 : i64} {
  func.func @kernel(%arg0: i32, %arg1: memref<32x144xbf16, #tpu.memory_space<vmem>>, %arg2: memref<144x128xbf16, #tpu.memory_space<vmem>>, %arg3: memref<32x1xf32, #tpu.memory_space<vmem>>, %arg4: memref<32x128xbf16, #tpu.memory_space<vmem>>) attributes {dimension_semantics = [#tpu.dimension_semantics<parallel>], iteration_bounds = array<i64: 1>, scalar_prefetch = 0 : i64, scratch_operands = 0 : i64, tpu.core_type = #tpu.core_type<tc>, window_params = [{pipeline_mode = #tpu.pipeline_mode<synchronous>, transform_indices = @transform_0, window_bounds = array<i64: 32, 144>}, {transform_indices = @transform_1, window_bounds = array<i64: 144, 128>}, {pipeline_mode = #tpu.pipeline_mode<synchronous>, transform_indices = @transform_2, window_bounds = array<i64: 32, 1>}, {transform_indices = @transform_3, window_bounds = array<i64: 32, 128>}]} {
    %c0 = arith.constant 0 : index
    %c0_0 = arith.constant 0 : index
    %0 = vector.load %arg1[%c0, %c0_0] : memref<32x144xbf16, #tpu.memory_space<vmem>>, vector<32x144xbf16>
    %c0_1 = arith.constant 0 : index
    %c0_2 = arith.constant 0 : index
    %1 = vector.load %arg2[%c0_1, %c0_2] : memref<144x128xbf16, #tpu.memory_space<vmem>>, vector<144x128xbf16>
    %cst = arith.constant dense<0.000000e+00> : vector<32x128xf32>
    %2 = tpu.matmul %0, %1, %cst {dimension_numbers = #tpu.dot_dimension_numbers<[1], [0], [0], [1], [0, 0, 1, 1], [], []>} : vector<32x144xbf16>, vector<144x128xbf16>, vector<32x128xf32> -> vector<32x128xf32>
    %c0_3 = arith.constant 0 : index
    %c0_4 = arith.constant 0 : index
    %3 = vector.load %arg3[%c0_3, %c0_4] : memref<32x1xf32, #tpu.memory_space<vmem>>, vector<32x1xf32>
    %4 = vector.broadcast %3 : vector<32x1xf32> to vector<32x128xf32>
    %5 = arith.addf %2, %4 : vector<32x128xf32>
    %cst_5 = arith.constant 0.000000e+00 : f32
    %6 = vector.broadcast %cst_5 : f32 to vector<32x128xf32>
    %7 = arith.maximumf %5, %6 : vector<32x128xf32>
    %8 = arith.truncf %7 : vector<32x128xf32> to vector<32x128xbf16>
    %c0_6 = arith.constant 0 : index
    %c0_7 = arith.constant 0 : index
    %9 = vector.load %arg4[%c0_6, %c0_7] : memref<32x128xbf16, #tpu.memory_space<vmem>>, vector<32x128xbf16>
    tpu.vector_store %arg4[%c0_6, %c0_7], %8 {strides = array<i32>} : memref<32x128xbf16, #tpu.memory_space<vmem>>, vector<32x128xbf16>,
    return
  }
  func.func @transform_0(%arg0: i32) -> (i32, i32) {
    %c0_i32 = arith.constant 0 : i32
    %c0_i32_0 = arith.constant 0 : i32
    %c0_i32_1 = arith.constant 0 : i32
    return %c0_i32, %c0_i32_0 : i32, i32
  }
  func.func @transform_1(%arg0: i32) -> (i32, i32) {
    %c0_i32 = arith.constant 0 : i32
    %c0_i32_0 = arith.constant 0 : i32
    return %c0_i32, %arg0 : i32, i32
  }
  func.func @transform_2(%arg0: i32) -> (i32, i32) {
    %c0_i32 = arith.constant 0 : i32
    %c0_i32_0 = arith.constant 0 : i32
    %c0_i32_1 = arith.constant 0 : i32
    return %c0_i32, %c0_i32_0 : i32, i32
  }
  func.func @transform_3(%arg0: i32) -> (i32, i32) {
    %c0_i32 = arith.constant 0 : i32
    %c0_i32_0 = arith.constant 0 : i32
    return %c0_i32, %arg0 : i32, i32
  }
}

module attributes {stable_mosaic.version = 11 : i64} {
  func.func @_aspp_fused_kernel(%arg0: i32, %arg1: memref<16x32xbf16, #tpu.memory_space<vmem>>, %arg2: memref<32x128xbf16, #tpu.memory_space<vmem>>, %arg3: memref<16x1xf32, #tpu.memory_space<vmem>>, %arg4: memref<16x288xbf16, #tpu.memory_space<vmem>>, %arg5: memref<288x128xbf16, #tpu.memory_space<vmem>>, %arg6: memref<16x1xf32, #tpu.memory_space<vmem>>, %arg7: memref<16x288xbf16, #tpu.memory_space<vmem>>, %arg8: memref<288x128xbf16, #tpu.memory_space<vmem>>, %arg9: memref<16x1xf32, #tpu.memory_space<vmem>>, %arg10: memref<16x16xbf16, #tpu.memory_space<vmem>>, %arg11: memref<16x16xbf16, #tpu.memory_space<vmem>>, %arg12: memref<16x16xbf16, #tpu.memory_space<vmem>>, %arg13: memref<16x128xf32, #tpu.memory_space<vmem>>, %arg14: memref<16x128xbf16, #tpu.memory_space<vmem>>) attributes {dimension_semantics = [#tpu.dimension_semantics<parallel>], iteration_bounds = array<i64: 1>, scalar_prefetch = 0 : i64, scratch_operands = 0 : i64, tpu.core_type = #tpu.core_type<tc>, window_params = [{pipeline_mode = #tpu.pipeline_mode<synchronous>, transform_indices = @transform_0, window_bounds = array<i64: 16, 32>}, {transform_indices = @transform_1, window_bounds = array<i64: 32, 128>}, {pipeline_mode = #tpu.pipeline_mode<synchronous>, transform_indices = @transform_2, window_bounds = array<i64: 16, 1>}, {pipeline_mode = #tpu.pipeline_mode<synchronous>, transform_indices = @transform_3, window_bounds = array<i64: 16, 288>}, {transform_indices = @transform_4, window_bounds = array<i64: 288, 128>}, {pipeline_mode = #tpu.pipeline_mode<synchronous>, transform_indices = @transform_5, window_bounds = array<i64: 16, 1>}, {pipeline_mode = #tpu.pipeline_mode<synchronous>, transform_indices = @transform_6, window_bounds = array<i64: 16, 288>}, {transform_indices = @transform_7, window_bounds = array<i64: 288, 128>}, {pipeline_mode = #tpu.pipeline_mode<synchronous>, transform_indices = @transform_8, window_bounds = array<i64: 16, 1>}, {pipeline_mode = #tpu.pipeline_mode<synchronous>, transform_indices = @transform_9, window_bounds = array<i64: 16, 16>}, {pipeline_mode = #tpu.pipeline_mode<synchronous>, transform_indices = @transform_10, window_bounds = array<i64: 16, 16>}, {pipeline_mode = #tpu.pipeline_mode<synchronous>, transform_indices = @transform_11, window_bounds = array<i64: 16, 16>}, {transform_indices = @transform_12, window_bounds = array<i64: 16, 128>}, {transform_indices = @transform_13, window_bounds = array<i64: 16, 128>}]} {
    %c0 = arith.constant 0 : index
    %c0_0 = arith.constant 0 : index
    %0 = vector.load %arg1[%c0, %c0_0] : memref<16x32xbf16, #tpu.memory_space<vmem>>, vector<16x32xbf16>
    %c0_1 = arith.constant 0 : index
    %c0_2 = arith.constant 0 : index
    %1 = vector.load %arg2[%c0_1, %c0_2] : memref<32x128xbf16, #tpu.memory_space<vmem>>, vector<32x128xbf16>
    %cst = arith.constant dense<0.000000e+00> : vector<16x128xf32>
    %2 = tpu.matmul %0, %1, %cst {dimension_numbers = #tpu.dot_dimension_numbers<[1], [0], [0], [1], [0, 0, 1, 1], [], []>} : vector<16x32xbf16>, vector<32x128xbf16>, vector<16x128xf32> -> vector<16x128xf32>
    %c0_3 = arith.constant 0 : index
    %c0_4 = arith.constant 0 : index
    %3 = vector.load %arg3[%c0_3, %c0_4] : memref<16x1xf32, #tpu.memory_space<vmem>>, vector<16x1xf32>
    %4 = vector.broadcast %3 : vector<16x1xf32> to vector<16x128xf32>
    %5 = arith.addf %2, %4 : vector<16x128xf32>
    %cst_5 = arith.constant 0.000000e+00 : f32
    %6 = vector.broadcast %cst_5 : f32 to vector<16x128xf32>
    %7 = arith.maximumf %5, %6 : vector<16x128xf32>
    %c0_6 = arith.constant 0 : index
    %c0_7 = arith.constant 0 : index
    %8 = vector.load %arg4[%c0_6, %c0_7] : memref<16x288xbf16, #tpu.memory_space<vmem>>, vector<16x288xbf16>
    %c0_8 = arith.constant 0 : index
    %c0_9 = arith.constant 0 : index
    %9 = vector.load %arg5[%c0_8, %c0_9] : memref<288x128xbf16, #tpu.memory_space<vmem>>, vector<288x128xbf16>
    %cst_10 = arith.constant dense<0.000000e+00> : vector<16x128xf32>
    %10 = tpu.matmul %8, %9, %cst_10 {dimension_numbers = #tpu.dot_dimension_numbers<[1], [0], [0], [1], [0, 0, 1, 1], [], []>} : vector<16x288xbf16>, vector<288x128xbf16>, vector<16x128xf32> -> vector<16x128xf32>
    %c0_11 = arith.constant 0 : index
    %c0_12 = arith.constant 0 : index
    %11 = vector.load %arg6[%c0_11, %c0_12] : memref<16x1xf32, #tpu.memory_space<vmem>>, vector<16x1xf32>
    %12 = vector.broadcast %11 : vector<16x1xf32> to vector<16x128xf32>
    %13 = arith.addf %10, %12 : vector<16x128xf32>
    %cst_13 = arith.constant 0.000000e+00 : f32
    %14 = vector.broadcast %cst_13 : f32 to vector<16x128xf32>
    %15 = arith.maximumf %13, %14 : vector<16x128xf32>
    %c0_14 = arith.constant 0 : index
    %c0_15 = arith.constant 0 : index
    %16 = vector.load %arg7[%c0_14, %c0_15] : memref<16x288xbf16, #tpu.memory_space<vmem>>, vector<16x288xbf16>
    %c0_16 = arith.constant 0 : index
    %c0_17 = arith.constant 0 : index
    %17 = vector.load %arg8[%c0_16, %c0_17] : memref<288x128xbf16, #tpu.memory_space<vmem>>, vector<288x128xbf16>
    %cst_18 = arith.constant dense<0.000000e+00> : vector<16x128xf32>
    %18 = tpu.matmul %16, %17, %cst_18 {dimension_numbers = #tpu.dot_dimension_numbers<[1], [0], [0], [1], [0, 0, 1, 1], [], []>} : vector<16x288xbf16>, vector<288x128xbf16>, vector<16x128xf32> -> vector<16x128xf32>
    %c0_19 = arith.constant 0 : index
    %c0_20 = arith.constant 0 : index
    %19 = vector.load %arg9[%c0_19, %c0_20] : memref<16x1xf32, #tpu.memory_space<vmem>>, vector<16x1xf32>
    %20 = vector.broadcast %19 : vector<16x1xf32> to vector<16x128xf32>
    %21 = arith.addf %18, %20 : vector<16x128xf32>
    %cst_21 = arith.constant 0.000000e+00 : f32
    %22 = vector.broadcast %cst_21 : f32 to vector<16x128xf32>
    %23 = arith.maximumf %21, %22 : vector<16x128xf32>
    %c0_22 = arith.constant 0 : index
    %c0_23 = arith.constant 0 : index
    %24 = vector.load %arg13[%c0_22, %c0_23] : memref<16x128xf32, #tpu.memory_space<vmem>>, vector<16x128xf32>
    %c0_24 = arith.constant 0 : index
    %c0_25 = arith.constant 0 : index
    %25 = vector.load %arg10[%c0_24, %c0_25] : memref<16x16xbf16, #tpu.memory_space<vmem>>, vector<16x16xbf16>
    %26 = arith.truncf %7 : vector<16x128xf32> to vector<16x128xbf16>
    %cst_26 = arith.constant dense<0.000000e+00> : vector<16x128xf32>
    %27 = tpu.matmul %25, %26, %cst_26 {dimension_numbers = #tpu.dot_dimension_numbers<[1], [0], [0], [1], [0, 0, 1, 1], [], []>} : vector<16x16xbf16>, vector<16x128xbf16>, vector<16x128xf32> -> vector<16x128xf32>
    %28 = arith.addf %24, %27 : vector<16x128xf32>
    %c0_27 = arith.constant 0 : index
    %c0_28 = arith.constant 0 : index
    %29 = vector.load %arg11[%c0_27, %c0_28] : memref<16x16xbf16, #tpu.memory_space<vmem>>, vector<16x16xbf16>
    %30 = arith.truncf %15 : vector<16x128xf32> to vector<16x128xbf16>
    %cst_29 = arith.constant dense<0.000000e+00> : vector<16x128xf32>
    %31 = tpu.matmul %29, %30, %cst_29 {dimension_numbers = #tpu.dot_dimension_numbers<[1], [0], [0], [1], [0, 0, 1, 1], [], []>} : vector<16x16xbf16>, vector<16x128xbf16>, vector<16x128xf32> -> vector<16x128xf32>
    %32 = arith.addf %28, %31 : vector<16x128xf32>
    %c0_30 = arith.constant 0 : index
    %c0_31 = arith.constant 0 : index
    %33 = vector.load %arg12[%c0_30, %c0_31] : memref<16x16xbf16, #tpu.memory_space<vmem>>, vector<16x16xbf16>
    %34 = arith.truncf %23 : vector<16x128xf32> to vector<16x128xbf16>
    %cst_32 = arith.constant dense<0.000000e+00> : vector<16x128xf32>
    %35 = tpu.matmul %33, %34, %cst_32 {dimension_numbers = #tpu.dot_dimension_numbers<[1], [0], [0], [1], [0, 0, 1, 1], [], []>} : vector<16x16xbf16>, vector<16x128xbf16>, vector<16x128xf32> -> vector<16x128xf32>
    %36 = arith.addf %32, %35 : vector<16x128xf32>
    %cst_33 = arith.constant 0.000000e+00 : f32
    %37 = vector.broadcast %cst_33 : f32 to vector<16x128xf32>
    %38 = arith.maximumf %36, %37 : vector<16x128xf32>
    %39 = arith.truncf %38 : vector<16x128xf32> to vector<16x128xbf16>
    %c0_34 = arith.constant 0 : index
    %c0_35 = arith.constant 0 : index
    %40 = vector.load %arg14[%c0_34, %c0_35] : memref<16x128xbf16, #tpu.memory_space<vmem>>, vector<16x128xbf16>
    tpu.vector_store %arg14[%c0_34, %c0_35], %39 {strides = array<i32>} : memref<16x128xbf16, #tpu.memory_space<vmem>>, vector<16x128xbf16>,
    return
  }
  func.func @transform_0(%arg0: i32) -> (i32, i32) {
    %c0_i32 = arith.constant 0 : i32
    %c0_i32_0 = arith.constant 0 : i32
    %c0_i32_1 = arith.constant 0 : i32
    return %c0_i32, %c0_i32_0 : i32, i32
  }
  func.func @transform_1(%arg0: i32) -> (i32, i32) {
    %c0_i32 = arith.constant 0 : i32
    %c0_i32_0 = arith.constant 0 : i32
    return %c0_i32, %arg0 : i32, i32
  }
  func.func @transform_2(%arg0: i32) -> (i32, i32) {
    %c0_i32 = arith.constant 0 : i32
    %c0_i32_0 = arith.constant 0 : i32
    %c0_i32_1 = arith.constant 0 : i32
    return %c0_i32, %c0_i32_0 : i32, i32
  }
  func.func @transform_3(%arg0: i32) -> (i32, i32) {
    %c0_i32 = arith.constant 0 : i32
    %c0_i32_0 = arith.constant 0 : i32
    %c0_i32_1 = arith.constant 0 : i32
    return %c0_i32, %c0_i32_0 : i32, i32
  }
  func.func @transform_4(%arg0: i32) -> (i32, i32) {
    %c0_i32 = arith.constant 0 : i32
    %c0_i32_0 = arith.constant 0 : i32
    return %c0_i32, %arg0 : i32, i32
  }
  func.func @transform_5(%arg0: i32) -> (i32, i32) {
    %c0_i32 = arith.constant 0 : i32
    %c0_i32_0 = arith.constant 0 : i32
    %c0_i32_1 = arith.constant 0 : i32
    return %c0_i32, %c0_i32_0 : i32, i32
  }
  func.func @transform_6(%arg0: i32) -> (i32, i32) {
    %c0_i32 = arith.constant 0 : i32
    %c0_i32_0 = arith.constant 0 : i32
    %c0_i32_1 = arith.constant 0 : i32
    return %c0_i32, %c0_i32_0 : i32, i32
  }
  func.func @transform_7(%arg0: i32) -> (i32, i32) {
    %c0_i32 = arith.constant 0 : i32
    %c0_i32_0 = arith.constant 0 : i32
    return %c0_i32, %arg0 : i32, i32
  }
  func.func @transform_8(%arg0: i32) -> (i32, i32) {
    %c0_i32 = arith.constant 0 : i32
    %c0_i32_0 = arith.constant 0 : i32
    %c0_i32_1 = arith.constant 0 : i32
    return %c0_i32, %c0_i32_0 : i32, i32
  }
  func.func @transform_9(%arg0: i32) -> (i32, i32) {
    %c0_i32 = arith.constant 0 : i32
    %c0_i32_0 = arith.constant 0 : i32
    %c0_i32_1 = arith.constant 0 : i32
    return %c0_i32, %c0_i32_0 : i32, i32
  }
  func.func @transform_10(%arg0: i32) -> (i32, i32) {
    %c0_i32 = arith.constant 0 : i32
    %c0_i32_0 = arith.constant 0 : i32
    %c0_i32_1 = arith.constant 0 : i32
    return %c0_i32, %c0_i32_0 : i32, i32
  }
  func.func @transform_11(%arg0: i32) -> (i32, i32) {
    %c0_i32 = arith.constant 0 : i32
    %c0_i32_0 = arith.constant 0 : i32
    %c0_i32_1 = arith.constant 0 : i32
    return %c0_i32, %c0_i32_0 : i32, i32
  }
  func.func @transform_12(%arg0: i32) -> (i32, i32) {
    %c0_i32 = arith.constant 0 : i32
    %c0_i32_0 = arith.constant 0 : i32
    return %c0_i32, %arg0 : i32, i32
  }
  func.func @transform_13(%arg0: i32) -> (i32, i32) {
    %c0_i32 = arith.constant 0 : i32
    %c0_i32_0 = arith.constant 0 : i32
    return %c0_i32, %arg0 : i32, i32
  }
}

module attributes {stable_mosaic.version = 11 : i64} {
  func.func @_heads_fused_kernel(%arg0: i32, %arg1: memref<16x144xbf16, #tpu.memory_space<vmem>>, %arg2: memref<144x128xbf16, #tpu.memory_space<vmem>>, %arg3: memref<16x1xf32, #tpu.memory_space<vmem>>, %arg4: memref<8x16xbf16, #tpu.memory_space<vmem>>, %arg5: memref<8x1xf32, #tpu.memory_space<vmem>>, %arg6: memref<8x144xbf16, #tpu.memory_space<vmem>>, %arg7: memref<144x128xbf16, #tpu.memory_space<vmem>>, %arg8: memref<8x1xf32, #tpu.memory_space<vmem>>, %arg9: memref<8x8xbf16, #tpu.memory_space<vmem>>, %arg10: memref<8x1xf32, #tpu.memory_space<vmem>>, %arg11: memref<16x128xf32, #tpu.memory_space<vmem>>) attributes {dimension_semantics = [#tpu.dimension_semantics<parallel>], iteration_bounds = array<i64: 1>, scalar_prefetch = 0 : i64, scratch_operands = 0 : i64, tpu.core_type = #tpu.core_type<tc>, window_params = [{pipeline_mode = #tpu.pipeline_mode<synchronous>, transform_indices = @transform_0, window_bounds = array<i64: 16, 144>}, {transform_indices = @transform_1, window_bounds = array<i64: 144, 128>}, {pipeline_mode = #tpu.pipeline_mode<synchronous>, transform_indices = @transform_2, window_bounds = array<i64: 16, 1>}, {pipeline_mode = #tpu.pipeline_mode<synchronous>, transform_indices = @transform_3, window_bounds = array<i64: 8, 16>}, {pipeline_mode = #tpu.pipeline_mode<synchronous>, transform_indices = @transform_4, window_bounds = array<i64: 8, 1>}, {pipeline_mode = #tpu.pipeline_mode<synchronous>, transform_indices = @transform_5, window_bounds = array<i64: 8, 144>}, {transform_indices = @transform_6, window_bounds = array<i64: 144, 128>}, {pipeline_mode = #tpu.pipeline_mode<synchronous>, transform_indices = @transform_7, window_bounds = array<i64: 8, 1>}, {pipeline_mode = #tpu.pipeline_mode<synchronous>, transform_indices = @transform_8, window_bounds = array<i64: 8, 8>}, {pipeline_mode = #tpu.pipeline_mode<synchronous>, transform_indices = @transform_9, window_bounds = array<i64: 8, 1>}, {transform_indices = @transform_10, window_bounds = array<i64: 16, 128>}]} {
    %c0 = arith.constant 0 : index
    %c0_0 = arith.constant 0 : index
    %0 = vector.load %arg1[%c0, %c0_0] : memref<16x144xbf16, #tpu.memory_space<vmem>>, vector<16x144xbf16>
    %c0_1 = arith.constant 0 : index
    %c0_2 = arith.constant 0 : index
    %1 = vector.load %arg2[%c0_1, %c0_2] : memref<144x128xbf16, #tpu.memory_space<vmem>>, vector<144x128xbf16>
    %cst = arith.constant dense<0.000000e+00> : vector<16x128xf32>
    %2 = tpu.matmul %0, %1, %cst {dimension_numbers = #tpu.dot_dimension_numbers<[1], [0], [0], [1], [0, 0, 1, 1], [], []>} : vector<16x144xbf16>, vector<144x128xbf16>, vector<16x128xf32> -> vector<16x128xf32>
    %c0_3 = arith.constant 0 : index
    %c0_4 = arith.constant 0 : index
    %3 = vector.load %arg3[%c0_3, %c0_4] : memref<16x1xf32, #tpu.memory_space<vmem>>, vector<16x1xf32>
    %4 = vector.broadcast %3 : vector<16x1xf32> to vector<16x128xf32>
    %5 = arith.addf %2, %4 : vector<16x128xf32>
    %cst_5 = arith.constant 0.000000e+00 : f32
    %6 = vector.broadcast %cst_5 : f32 to vector<16x128xf32>
    %7 = arith.maximumf %5, %6 : vector<16x128xf32>
    %c0_6 = arith.constant 0 : index
    %c0_7 = arith.constant 0 : index
    %8 = vector.load %arg4[%c0_6, %c0_7] : memref<8x16xbf16, #tpu.memory_space<vmem>>, vector<8x16xbf16>
    %9 = arith.truncf %7 : vector<16x128xf32> to vector<16x128xbf16>
    %cst_8 = arith.constant dense<0.000000e+00> : vector<8x128xf32>
    %10 = tpu.matmul %8, %9, %cst_8 {dimension_numbers = #tpu.dot_dimension_numbers<[1], [0], [0], [1], [0, 0, 1, 1], [], []>} : vector<8x16xbf16>, vector<16x128xbf16>, vector<8x128xf32> -> vector<8x128xf32>
    %c0_9 = arith.constant 0 : index
    %c0_10 = arith.constant 0 : index
    %11 = vector.load %arg5[%c0_9, %c0_10] : memref<8x1xf32, #tpu.memory_space<vmem>>, vector<8x1xf32>
    %12 = vector.broadcast %11 : vector<8x1xf32> to vector<8x128xf32>
    %13 = arith.addf %10, %12 : vector<8x128xf32>
    %c0_11 = arith.constant 0 : index
    %c0_12 = arith.constant 0 : index
    %14 = vector.load %arg6[%c0_11, %c0_12] : memref<8x144xbf16, #tpu.memory_space<vmem>>, vector<8x144xbf16>
    %c0_13 = arith.constant 0 : index
    %c0_14 = arith.constant 0 : index
    %15 = vector.load %arg7[%c0_13, %c0_14] : memref<144x128xbf16, #tpu.memory_space<vmem>>, vector<144x128xbf16>
    %cst_15 = arith.constant dense<0.000000e+00> : vector<8x128xf32>
    %16 = tpu.matmul %14, %15, %cst_15 {dimension_numbers = #tpu.dot_dimension_numbers<[1], [0], [0], [1], [0, 0, 1, 1], [], []>} : vector<8x144xbf16>, vector<144x128xbf16>, vector<8x128xf32> -> vector<8x128xf32>
    %c0_16 = arith.constant 0 : index
    %c0_17 = arith.constant 0 : index
    %17 = vector.load %arg8[%c0_16, %c0_17] : memref<8x1xf32, #tpu.memory_space<vmem>>, vector<8x1xf32>
    %18 = vector.broadcast %17 : vector<8x1xf32> to vector<8x128xf32>
    %19 = arith.addf %16, %18 : vector<8x128xf32>
    %cst_18 = arith.constant 0.000000e+00 : f32
    %20 = vector.broadcast %cst_18 : f32 to vector<8x128xf32>
    %21 = arith.maximumf %19, %20 : vector<8x128xf32>
    %c0_19 = arith.constant 0 : index
    %c0_20 = arith.constant 0 : index
    %22 = vector.load %arg9[%c0_19, %c0_20] : memref<8x8xbf16, #tpu.memory_space<vmem>>, vector<8x8xbf16>
    %23 = arith.truncf %21 : vector<8x128xf32> to vector<8x128xbf16>
    %cst_21 = arith.constant dense<0.000000e+00> : vector<8x128xf32>
    %24 = tpu.matmul %22, %23, %cst_21 {dimension_numbers = #tpu.dot_dimension_numbers<[1], [0], [0], [1], [0, 0, 1, 1], [], []>} : vector<8x8xbf16>, vector<8x128xbf16>, vector<8x128xf32> -> vector<8x128xf32>
    %c0_22 = arith.constant 0 : index
    %c0_23 = arith.constant 0 : index
    %25 = vector.load %arg10[%c0_22, %c0_23] : memref<8x1xf32, #tpu.memory_space<vmem>>, vector<8x1xf32>
    %26 = vector.broadcast %25 : vector<8x1xf32> to vector<8x128xf32>
    %27 = arith.addf %24, %26 : vector<8x128xf32>
    %c0_24 = arith.constant 0 : index
    %c0_25 = arith.constant 0 : index
    %28 = vector.load %arg11[%c0_24, %c0_25] : memref<16x128xf32, #tpu.memory_space<vmem>>, vector<8x128xf32>
    tpu.vector_store %arg11[%c0_24, %c0_25], %13 {strides = array<i32>} : memref<16x128xf32, #tpu.memory_space<vmem>>, vector<8x128xf32>,
    %c8 = arith.constant 8 : index
    %c0_26 = arith.constant 0 : index
    %29 = vector.load %arg11[%c8, %c0_26] : memref<16x128xf32, #tpu.memory_space<vmem>>, vector<8x128xf32>
    tpu.vector_store %arg11[%c8, %c0_26], %27 {strides = array<i32>} : memref<16x128xf32, #tpu.memory_space<vmem>>, vector<8x128xf32>,
    return
  }
  func.func @transform_0(%arg0: i32) -> (i32, i32) {
    %c0_i32 = arith.constant 0 : i32
    %c0_i32_0 = arith.constant 0 : i32
    %c0_i32_1 = arith.constant 0 : i32
    return %c0_i32, %c0_i32_0 : i32, i32
  }
  func.func @transform_1(%arg0: i32) -> (i32, i32) {
    %c0_i32 = arith.constant 0 : i32
    %c0_i32_0 = arith.constant 0 : i32
    return %c0_i32, %arg0 : i32, i32
  }
  func.func @transform_2(%arg0: i32) -> (i32, i32) {
    %c0_i32 = arith.constant 0 : i32
    %c0_i32_0 = arith.constant 0 : i32
    %c0_i32_1 = arith.constant 0 : i32
    return %c0_i32, %c0_i32_0 : i32, i32
  }
  func.func @transform_3(%arg0: i32) -> (i32, i32) {
    %c0_i32 = arith.constant 0 : i32
    %c0_i32_0 = arith.constant 0 : i32
    %c0_i32_1 = arith.constant 0 : i32
    return %c0_i32, %c0_i32_0 : i32, i32
  }
  func.func @transform_4(%arg0: i32) -> (i32, i32) {
    %c0_i32 = arith.constant 0 : i32
    %c0_i32_0 = arith.constant 0 : i32
    %c0_i32_1 = arith.constant 0 : i32
    return %c0_i32, %c0_i32_0 : i32, i32
  }
  func.func @transform_5(%arg0: i32) -> (i32, i32) {
    %c0_i32 = arith.constant 0 : i32
    %c0_i32_0 = arith.constant 0 : i32
    %c0_i32_1 = arith.constant 0 : i32
    return %c0_i32, %c0_i32_0 : i32, i32
  }
  func.func @transform_6(%arg0: i32) -> (i32, i32) {
    %c0_i32 = arith.constant 0 : i32
    %c0_i32_0 = arith.constant 0 : i32
    return %c0_i32, %arg0 : i32, i32
  }
  func.func @transform_7(%arg0: i32) -> (i32, i32) {
    %c0_i32 = arith.constant 0 : i32
    %c0_i32_0 = arith.constant 0 : i32
    %c0_i32_1 = arith.constant 0 : i32
    return %c0_i32, %c0_i32_0 : i32, i32
  }
  func.func @transform_8(%arg0: i32) -> (i32, i32) {
    %c0_i32 = arith.constant 0 : i32
    %c0_i32_0 = arith.constant 0 : i32
    %c0_i32_1 = arith.constant 0 : i32
    return %c0_i32, %c0_i32_0 : i32, i32
  }
  func.func @transform_9(%arg0: i32) -> (i32, i32) {
    %c0_i32 = arith.constant 0 : i32
    %c0_i32_0 = arith.constant 0 : i32
    %c0_i32_1 = arith.constant 0 : i32
    return %c0_i32, %c0_i32_0 : i32, i32
  }
  func.func @transform_10(%arg0: i32) -> (i32, i32) {
    %c0_i32 = arith.constant 0 : i32
    %c0_i32_0 = arith.constant 0 : i32
    return %c0_i32, %arg0 : i32, i32
  }
}

module attributes {stable_mosaic.version = 11 : i64} {
  func.func @kernel(%arg0: i32, %arg1: memref<32x64xf32, #tpu.memory_space<vmem>>, %arg2: memref<64x512xf32, #tpu.memory_space<vmem>>, %arg3: memref<32x1xf32, #tpu.memory_space<vmem>>, %arg4: memref<32x512xf32, #tpu.memory_space<vmem>>) attributes {dimension_semantics = [#tpu.dimension_semantics<parallel>], iteration_bounds = array<i64: 2>, scalar_prefetch = 0 : i64, scratch_operands = 0 : i64, tpu.core_type = #tpu.core_type<tc>, window_params = [{pipeline_mode = #tpu.pipeline_mode<synchronous>, transform_indices = @transform_0, window_bounds = array<i64: 32, 64>}, {transform_indices = @transform_1, window_bounds = array<i64: 64, 512>}, {pipeline_mode = #tpu.pipeline_mode<synchronous>, transform_indices = @transform_2, window_bounds = array<i64: 32, 1>}, {transform_indices = @transform_3, window_bounds = array<i64: 32, 512>}]} {
    %c0 = arith.constant 0 : index
    %c0_0 = arith.constant 0 : index
    %0 = vector.load %arg1[%c0, %c0_0] : memref<32x64xf32, #tpu.memory_space<vmem>>, vector<32x64xf32>
    %c0_1 = arith.constant 0 : index
    %c0_2 = arith.constant 0 : index
    %1 = vector.load %arg2[%c0_1, %c0_2] : memref<64x512xf32, #tpu.memory_space<vmem>>, vector<64x512xf32>
    %cst = arith.constant dense<0.000000e+00> : vector<32x512xf32>
    %2 = tpu.matmul %0, %1, %cst {dimension_numbers = #tpu.dot_dimension_numbers<[1], [0], [0], [1], [0, 0, 1, 1], [], []>} : vector<32x64xf32>, vector<64x512xf32>, vector<32x512xf32> -> vector<32x512xf32>
    %c0_3 = arith.constant 0 : index
    %c0_4 = arith.constant 0 : index
    %3 = vector.load %arg3[%c0_3, %c0_4] : memref<32x1xf32, #tpu.memory_space<vmem>>, vector<32x1xf32>
    %4 = vector.broadcast %3 : vector<32x1xf32> to vector<32x512xf32>
    %5 = arith.addf %2, %4 : vector<32x512xf32>
    %c0_5 = arith.constant 0 : index
    %c0_6 = arith.constant 0 : index
    %6 = vector.load %arg4[%c0_5, %c0_6] : memref<32x512xf32, #tpu.memory_space<vmem>>, vector<32x512xf32>
    tpu.vector_store %arg4[%c0_5, %c0_6], %5 {strides = array<i32>} : memref<32x512xf32, #tpu.memory_space<vmem>>, vector<32x512xf32>,
    return
  }
  func.func @transform_0(%arg0: i32) -> (i32, i32) {
    %c0_i32 = arith.constant 0 : i32
    %c0_i32_0 = arith.constant 0 : i32
    %c0_i32_1 = arith.constant 0 : i32
    return %c0_i32, %c0_i32_0 : i32, i32
  }
  func.func @transform_1(%arg0: i32) -> (i32, i32) {
    %c0_i32 = arith.constant 0 : i32
    %c0_i32_0 = arith.constant 0 : i32
    return %c0_i32, %arg0 : i32, i32
  }
  func.func @transform_2(%arg0: i32) -> (i32, i32) {
    %c0_i32 = arith.constant 0 : i32
    %c0_i32_0 = arith.constant 0 : i32
    %c0_i32_1 = arith.constant 0 : i32
    return %c0_i32, %c0_i32_0 : i32, i32
  }
  func.func @transform_3(%arg0: i32) -> (i32, i32) {
    %c0_i32 = arith.constant 0 : i32
    %c0_i32_0 = arith.constant 0 : i32
    return %c0_i32, %arg0 : i32, i32
  }
}

</mosaic_0001>

<bundles_post_ra>
// kernel: _lambda_.6
= control target key start
LH: loop header
LB: loop body
LE: loop exit
PB: predicated region body
PF: predicated region fallthrough
CT: control target
= control target key end

     0   :  { %s468_s12 = smov 0   ;;  %s470_s13 = smov 0   ;;  %s526_s0 = inlined_call_operand.vmem [shape: bf16[8,32], index: 0, kind: input, shape index: {}]   ;;  %s527_s1 = inlined_call_operand.vmem [shape: bf16[32,512], index: 1, kind: input, shape index: {}]   ;;  %s528_s2 = inlined_call_operand.vmem [shape: f32[8,1], index: 2, kind: input, shape index: {}]   ;;  %s529_s3 = inlined_call_operand.vmem [shape: bf16[8,512], index: 3, kind: output, shape index: {}]  }
   0x1   :  { %s472_s14 = smov 0  }
   0x2 LB: > { %s370_s15 = sadd.s32 4294967295, %s445_s14   ;;  %s485_s16 = sadd.s32 1, %s445_s14   ;;  %s445_s14 = sphi %s472_s14, %s532_s14   ;;  %s441_s13 = sphi %s470_s13, %s531_s13   ;;  %s437_s12 = sphi %s468_s12, %s530_s12  }
   0x3   : > { %s38_s17 = ssub.s32 %s445_s14, %s485_s16  ;;  %s41_s18 = sadd.s32 1, %s441_s13 }
   0x4   : > { %p39_p0 = scmp.eq.s32.totalorder %s38_s17, 0  ;;  %p48_p1 = scmp.ne.s32.totalorder %s441_s13, %s437_s12 }
   0x5   : > { %p49_p2 = scmp.eq.s32.totalorder %s445_s14, 0  ;;  %p373_p4 = scmp.ge.s32.totalorder %s445_s14, 2 }
   0x6   : > { %s494_s19 = scalar_select %p39_p0, %s441_s13, %s41_s18  }
   0x7   : > { %p50_p3 = por %p49_p2, %p48_p1  ;;  %127 = sbr.rel (%p373_p4) target bundleno = 21 (0x15), region = 24 }
   0xe   : > { %130 = sbr.rel (!%p50_p3) target bundleno = 21 (0x15), region = 28  ;;  %s132_s20 = sand.u32 (%p50_p3), 1, %s441_s13  }
   0xf   : > { %s389_s21 = sshll.u32 (%p50_p3), %s445_s14, 3  ;;  %s374_s22 = sshll.u32 (%p50_p3), %s132_s20, 5 }
  0x10   : > { %s137_s25 = scalar_lea.vmem (%p50_p3), %s527_s1, %s389_s21  ;;  %s134_s26 = scalar_lea.vmem (%p50_p3), [#allocation2], %s374_s22 }
  0x11   : > { %v171_v0 = vld [vmem:[%s137_s25] sm:$0xff] (%p50_p3)  ;;  %v173_v1 = vld [vmem:[%s137_s25 + $0x10] sm:$0xff] (%p50_p3) }
  0x12   : > { %v175_v2 = vld [vmem:[%s137_s25 + $0x20] sm:$0xff] (%p50_p3)  ;;  %172 = vst [vmem:[%s134_s26] sm:$0xff] (%p50_p3), %v171_v0  ;;  %174 = vst [vmem:[%s134_s26 + $0x8] sm:$0xff] (%p50_p3), %v173_v1  ;;  %v177_v3 = vld [vmem:[%s137_s25 + $0x30] sm:$0xff] (%p50_p3) }
  0x13   : > { %176 = vst [vmem:[%s134_s26 + $0x10] sm:$0xff] (%p50_p3), %v175_v2  ;;  %178 = vst [vmem:[%s134_s26 + $0x18] sm:$0xff] (%p50_p3), %v177_v3 }
  0x15 PF: > { %p377_p5 = scmp.ge.s32.totalorder %s445_s14, 1  ;;  %p183_p6 = scmp.lt.s32.totalorder %s445_s14, 3 }
  0x17   : > { %p184_p7 = pnand %p377_p5, %p183_p6 }
  0x18   : > { %s190_s27 = sand.u32 (!%p184_p7), 1, %s437_s12   ;;  %v226_v4 = vld [vmem:[%s528_s2] sm:$0xff] (!%p184_p7)  ;;  %v447_v5 = vmov (!%p184_p7), 0   ;;  %vm252_vm0 = vcmask (!%p184_p7), 261120   ;;  %s379_s7 = sshll.u32 (!%p184_p7), %s370_s15, 1 }
  0x19   : > { %187 = sbr.rel (%p184_p7) target bundleno = 256 (0x100), region = 66  ;;  %s378_s30 = sshll.u32 (!%p184_p7), %s190_s27, 5  ;;  %288 = vmatprep.mubr.bf16.mxu0 (!%p184_p7), %v447_v5  ;;  %416 = vset.pattern.permute.xlu0 (!%p184_p7), %v447_v5  ;;  %v221_v10 = vld [vmem:[%s526_s0] sm:$0xf] (!%p184_p7) }
  0x1a   : > { %229 = vperm.xlu0 (!%p184_p7), %416, %v226_v4   ;;  %s192_s4 = scalar_lea.vmem (!%p184_p7), [#allocation2], %s378_s30  ;;  %p215_p8 = scmp.lt.s32.totalorder (!%p184_p7), %s379_s7, 3 }
  0x1b   : > { %v417_v6 = vld [vmem:[%s192_s4 + $0x4] ss:$8 sps:$4 sm:$0xff] (!%p184_p7)   ;;  %v419_v7 = vld [vmem:[%s192_s4] ss:$8 sps:$4 sm:$0xff] (!%p184_p7)   ;;  %v420_v8 = vld [vmem:[%s192_s4 + $0x14] ss:$8 sps:$4 sm:$0xff] (!%p184_p7)  }
  0x1c   : > { %256 = vmatprep.subr.bf16.mxu0 (!%p184_p7), %v417_v6  ;;  %v422_v9 = vld [vmem:[%s192_s4 + $0x10] ss:$8 sps:$4 sm:$0xff] (!%p184_p7)  }
  0x1d   : > { %257 = vmatpush1.bf16.msra.mxu0 (!%p184_p7), %v419_v7 }
  0x1e   : > { %258 = vmatprep.subr.bf16.mxu0 (!%p184_p7), %v420_v8 }
  0x20   : > { %s534_s7 = smov (!%p215_p8, %s379_s7), 3 }
  0x21   : > { %259 = vmatpush1.bf16.msra.mxu0 %v422_v9  ;;  %s380_s8 = sshll.u32 %s534_s7, 2 }
  0x22   : > { %s218_s11 = scalar_lea.vmem %s529_s3, %s380_s8 }
  0x24   : > { %385 = vmatmul.mubr.msk.bf16.vlgmr.msra.gmra.mrb[0].mxu0 %vm252_vm0, %v221_v10 }
  0x99   : > { %v230_v11 = vpop.permute.xlu0 %229 }
  0xf7   : > { %v290_v12 = vpop.f32.mrb[0].mxu0 }
  0xf8   : > { %v291_v13 = vadd.f32 %v290_v12, %v230_v11  ;;  %v292_v14 = vpop.f32.mrb[1].mxu0 }
  0xf9   : > { %v293_v15 = vadd.f32 %v292_v14, %v230_v11  ;;  %v294_v16 = vpop.f32.mrb[2].mxu0 }
  0xfa   : > { %v297_v17 = vmax.f32 %v291_v13, 0.0  ;;  %v295_v18 = vpop.f32.mrb[3].mxu0 }
  0xfb   : > { %v298_v19 = vmax.f32 %v293_v15, 0.0 }
  0xfd   : > { %v390_v20 = vpack.c.bf16 %v298_v19, %v297_v17 }
  0xff   : > { %307 = vst [vmem:[%s218_s11] sm:$0xff] %v390_v20 }
 0x100 PF: > { %p10_p9 = scmp.ge.s32.totalorder %s485_s16, 4   ;;  %s530_s12 = smov %s441_s13 }
 0x101   : > { %s531_s13 = smov %s494_s19  ;;  %s532_s14 = smov %s485_s16 }
 0x102   :  { %12 = sbr.rel (!%p10_p9) target bundleno = 2 (0x2), region = 105 }

// kernel: _lambda_.7
= control target key start
LH: loop header
LB: loop body
LE: loop exit
PB: predicated region body
PF: predicated region fallthrough
CT: control target
= control target key end

     0   :  { %v181_v0 = vmov 0.0   ;;  %vm182_vm0 = vmmov 0   ;;  %v183_v2 = vmov 0   ;;  %vm74_vm1 = vcmask 654336   ;;  %s231_s1 = inlined_call_operand.vmem [shape: bf16[80,128], index: 1, kind: input, shape index: {}]   ;;  %s232_s2 = inlined_call_operand.vmem [shape: f32[16,1], index: 2, kind: input, shape index: {}]   ;;  %s233_s0 = inlined_call_operand.vmem [shape: bf16[16,80], index: 0, kind: input, shape index: {}]   ;;  %s234_s3 = inlined_call_operand.vmem [shape: bf16[16,128], index: 3, kind: output, shape index: {}]  }
   0x1   :  { %157 = vmatprep.subr.bf16.mxu0 %v181_v0  ;;  %v175_v1 = vld [vmem:[%s231_s1] sm:$0xff]   ;;  %167 = vmatprep.mubr.msk.bf16.mxu0 %vm182_vm0, %v181_v0  ;;  %v176_v3 = vld [vmem:[%s231_s1 + $0x8] sm:$0xff]   ;;  %v177_v4 = vld [vmem:[%s231_s1 + $0x10] sm:$0xff]  }
   0x2   :  { %174 = vset.pattern.permute.xlu0 %v183_v2  ;;  %158 = vmatpush3.bf16.msra.mxu0 %v175_v1  ;;  %v27_v5 = vld [vmem:[%s232_s2] sm:$0xff]  ;;  %v28_v6 = vld [vmem:[%s232_s2 + $0x8] sm:$0xff]  ;;  %v178_v7 = vld [vmem:[%s231_s1 + $0x18] sm:$0xff]  }
   0x3   :  { %159 = vmatprep.subr.bf16.mxu0 %v181_v0  ;;  %31 = vperm.xlu0 %174, %v27_v5   ;;  %v179_v8 = vld [vmem:[%s231_s1 + $0x20] sm:$0xff]  }
   0x4   :  { %v180_v9 = vld [vmem:[%s233_s0] sm:$0xff]  }
   0x6   :  { %160 = vmatpush3.bf16.msra.mxu0 %v176_v3 }
   0x7   :  { %161 = vmatprep.subr.bf16.mxu0 %v181_v0  ;;  %36 = vperm.xlu0 %174, %v28_v6  }
   0xa   :  { %162 = vmatpush3.bf16.msra.mxu0 %v177_v4 }
   0xb   :  { %163 = vmatprep.subr.bf16.mxu0 %v181_v0 }
   0xe   :  { %164 = vmatpush3.bf16.msra.mxu0 %v178_v7 }
   0xf   :  { %165 = vmatprep.subr.bf16.mxu0 %v181_v0 }
  0x12   :  { %166 = vmatpush3.bf16.msra.mxu0 %v179_v8 }
  0x15   :  { %168 = vmatmul.mubr.msk.bf16.vlgmr.msra.gmra.mrb[0].mxu0 %vm74_vm1, %v180_v9 }
  0x82   :  { %v32_v10 = vpop.permute.xlu0 %31 }
  0x86   :  { %v37_v14 = vpop.permute.xlu0 %36 }
  0xe8   :  { %v112_v11 = vpop.f32.mrb[0].mxu0 }
  0xe9   :  { %v113_v12 = vadd.f32 %v112_v11, %v32_v10  ;;  %v169_v13 = vpop.f32.mrb[1].mxu0 }
  0xea   :  { %v115_v15 = vpop.f32.mrb[2].mxu0 }
  0xeb   :  { %v116_v16 = vadd.f32 %v115_v15, %v37_v14  ;;  %v170_v17 = vpop.f32.mrb[3].mxu0  ;;  %v119_v18 = vmax.f32 %v113_v12, 0.0 }
  0xed   :  { %v120_v19 = vmax.f32 %v116_v16, 0.0 }
  0xef   :  { %v149_v20 = vpack.c.bf16 %v120_v19, %v119_v18 }
  0xf1   :  { %150 = vst [vmem:[%s234_s3] sm:$0xff] %v149_v20  }

// kernel: _lambda_.8
= control target key start
LH: loop header
LB: loop body
LE: loop exit
PB: predicated region body
PF: predicated region fallthrough
CT: control target
= control target key end

     0   :  { %v287_v0 = vmov 0   ;;  %vm133_vm0 = vcmask 130048   ;;  %s365_s1 = inlined_call_operand.vmem [shape: bf16[144,128], index: 1, kind: input, shape index: {}]   ;;  %s366_s0 = inlined_call_operand.vmem [shape: bf16[32,144], index: 0, kind: input, shape index: {}]   ;;  %s367_s2 = inlined_call_operand.vmem [shape: f32[32,1], index: 2, kind: input, shape index: {}]   ;;  %s368_s3 = inlined_call_operand.vmem [shape: bf16[32,128], index: 3, kind: output, shape index: {}]  }
   0x1   :  { %140 = vmatprep.subr.bf16.mxu0 %v287_v0  ;;  %251 = vmatprep.subr.bf16.mxu1 %v287_v0  ;;  %v272_v1 = vld [vmem:[%s365_s1] sm:$0xff]   ;;  %v273_v2 = vld [vmem:[%s365_s1 + $0x8] sm:$0xff]   ;;  %v274_v3 = vld [vmem:[%s365_s1 + $0x10] sm:$0xff]  }
   0x2   :  { %271 = vset.pattern.permute.xlu1 %v287_v0  ;;  %270 = vset.pattern.permute.xlu0 %v287_v0  ;;  %v275_v4 = vld [vmem:[%s365_s1 + $0x18] sm:$0xff]   ;;  %v283_v5 = vld [vmem:[%s366_s0 + $0x4] ss:$8 sps:$4 sm:$0xff]   ;;  %v39_v7 = vld [vmem:[%s367_s2 + $0x10] sm:$0xff] }
   0x3   :  { %141 = vmatpush1.bf16.msra.mxu0 %v272_v1  ;;  %260 = vmatpush1.bf16.msra.mxu1 %v272_v1  ;;  %v286_v6 = vld [vmem:[%s366_s0 + $0x14] ss:$8 sps:$4 sm:$0xff]   ;;  %v37_v8 = vld [vmem:[%s367_s2] sm:$0xff]  ;;  %v38_v11 = vld [vmem:[%s367_s2 + $0x8] sm:$0xff] }
   0x4   :  { %142 = vmatprep.subr.bf16.mxu0 %v287_v0  ;;  %252 = vmatprep.subr.bf16.mxu1 %v287_v0  ;;  %v40_v9 = vld [vmem:[%s367_s2 + $0x18] sm:$0xff]  ;;  %v276_v10 = vld [vmem:[%s365_s1 + $0x20] sm:$0xff]   ;;  %v277_v12 = vld [vmem:[%s365_s1 + $0x28] sm:$0xff]  }
   0x5   :  { %230 = vmatprep.mubr.msk.bf16.mxu0 %vm133_vm0, %v283_v5  ;;  %53 = vperm.xlu1 %271, %v39_v7   ;;  %v278_v13 = vld [vmem:[%s365_s1 + $0x30] sm:$0xff]   ;;  %v279_v14 = vld [vmem:[%s365_s1 + $0x38] sm:$0xff]   ;;  %v280_v15 = vld [vmem:[%s365_s1 + $0x40] sm:$0xff]  }
   0x6   :  { %231 = vmatprep.mubr.msk.bf16.mxu1 %vm133_vm0, %v286_v6  ;;  %43 = vperm.xlu0 %270, %v37_v8   ;;  %v281_v16 = vld [vmem:[%s366_s0] ss:$8 sps:$4 sm:$0xff]   ;;  %v284_v17 = vld [vmem:[%s366_s0 + $0x10] ss:$8 sps:$4 sm:$0xff]  }
   0x7   :  { %143 = vmatpush1.bf16.msra.mxu0 %v273_v2  ;;  %261 = vmatpush1.bf16.msra.mxu1 %v273_v2 }
   0x8   :  { %144 = vmatprep.subr.bf16.mxu0 %v287_v0  ;;  %253 = vmatprep.subr.bf16.mxu1 %v287_v0 }
   0x9   :  { %58 = vperm.xlu1 %271, %v40_v9  }
   0xa   :  { %48 = vperm.xlu0 %270, %v38_v11  }
   0xb   :  { %145 = vmatpush1.bf16.msra.mxu0 %v274_v3  ;;  %262 = vmatpush1.bf16.msra.mxu1 %v274_v3 }
   0xc   :  { %146 = vmatprep.subr.bf16.mxu0 %v287_v0  ;;  %254 = vmatprep.subr.bf16.mxu1 %v287_v0 }
   0xf   :  { %147 = vmatpush1.bf16.msra.mxu0 %v275_v4  ;;  %263 = vmatpush1.bf16.msra.mxu1 %v275_v4 }
  0x10   :  { %148 = vmatprep.subr.bf16.mxu0 %v287_v0  ;;  %255 = vmatprep.subr.bf16.mxu1 %v287_v0 }
  0x13   :  { %149 = vmatpush1.bf16.msra.mxu0 %v276_v10  ;;  %264 = vmatpush1.bf16.msra.mxu1 %v276_v10 }
  0x14   :  { %150 = vmatprep.subr.bf16.mxu0 %v287_v0  ;;  %256 = vmatprep.subr.bf16.mxu1 %v287_v0 }
  0x17   :  { %151 = vmatpush1.bf16.msra.mxu0 %v277_v12  ;;  %265 = vmatpush1.bf16.msra.mxu1 %v277_v12 }
  0x18   :  { %152 = vmatprep.subr.bf16.mxu0 %v287_v0  ;;  %257 = vmatprep.subr.bf16.mxu1 %v287_v0 }
  0x1b   :  { %153 = vmatpush1.bf16.msra.mxu0 %v278_v13  ;;  %266 = vmatpush1.bf16.msra.mxu1 %v278_v13 }
  0x1c   :  { %154 = vmatprep.subr.bf16.mxu0 %v287_v0  ;;  %258 = vmatprep.subr.bf16.mxu1 %v287_v0 }
  0x1f   :  { %155 = vmatpush1.bf16.msra.mxu0 %v279_v14  ;;  %267 = vmatpush1.bf16.msra.mxu1 %v279_v14 }
  0x20   :  { %156 = vmatprep.subr.bf16.mxu0 %v287_v0  ;;  %259 = vmatprep.subr.bf16.mxu1 %v287_v0 }
  0x23   :  { %157 = vmatpush1.bf16.msra.mxu0 %v280_v15  ;;  %268 = vmatpush1.bf16.msra.mxu1 %v280_v15 }
  0x26   :  { %173 = vmatmul.mubr.bf16.vlgmr.msra.gmra.mrb[0].mxu0 %v281_v16  ;;  %181 = vmatmul.mubr.bf16.vlgmr.msra.gmra.mrb[0].mxu1 %v284_v17 }
  0x84   :  { %v54_v18 = vpop.permute.xlu1 %53 }
  0x85   :  { %v44_v19 = vpop.permute.xlu0 %43 }
  0x88   :  { %v59_v20 = vpop.permute.xlu1 %58 }
  0x89   :  { %v49_v21 = vpop.permute.xlu0 %48 }
  0xf9   :  { %v174_v22 = vpop.f32.mrb[0].mxu0  ;;  %v182_v23 = vpop.f32.mrb[0].mxu1 }
  0xfa   :  { %v175_v24 = vadd.f32 %v174_v22, %v44_v19  ;;  %v183_v25 = vadd.f32 %v182_v23, %v54_v18  ;;  %v176_v26 = vpop.f32.mrb[1].mxu0  ;;  %v184_v27 = vpop.f32.mrb[1].mxu1 }
  0xfb   :  { %v177_v28 = vpop.f32.mrb[2].mxu0  ;;  %v185_v29 = vpop.f32.mrb[2].mxu1 }
  0xfc   :  { %v178_v30 = vadd.f32 %v177_v28, %v49_v21  ;;  %v186_v31 = vadd.f32 %v185_v29, %v59_v20  ;;  %v179_v32 = vpop.f32.mrb[3].mxu0  ;;  %v187_v33 = vpop.f32.mrb[3].mxu1  ;;  %v189_v34 = vmax.f32 %v175_v24, 0.0  ;;  %v191_v35 = vmax.f32 %v183_v25, 0.0 }
  0xfe   :  { %v190_v36 = vmax.f32 %v178_v30, 0.0  ;;  %v192_v37 = vmax.f32 %v186_v31, 0.0 }
 0x100   :  { %v243_v38 = vpack.c.bf16 %v190_v36, %v189_v34  ;;  %v248_v39 = vpack.c.bf16 %v192_v37, %v191_v35 }
 0x102   :  { %244 = vst [vmem:[%s368_s3] sm:$0xff] %v243_v38   ;;  %250 = vst [vmem:[%s368_s3 + $0x8] sm:$0xff] %v248_v39  }

// kernel: _lambda_.9
= control target key start
LH: loop header
LB: loop body
LE: loop exit
PB: predicated region body
PF: predicated region fallthrough
CT: control target
= control target key end

     0   :  { %v1061_v0 = vmov 0.0   ;;  %vm1062_vm0 = vmmov 0   ;;  %v1063_v3 = vmov 0   ;;  %vm80_vm1 = vcmask 261120   ;;  %s1332_s1 = inlined_call_operand.vmem [shape: bf16[32,128], index: 1, kind: input, shape index: {}]   ;;  %s1333_s4 = inlined_call_operand.vmem [shape: bf16[288,128], index: 4, kind: input, shape index: {}]   ;;  %s1334_s0 = inlined_call_operand.vmem [shape: bf16[16,32], index: 0, kind: input, shape index: {}]   ;;  %s1335_s3 = inlined_call_operand.vmem [shape: bf16[16,288], index: 3, kind: input, shape index: {}]   ;;  %s1336_s7 = inlined_call_operand.vmem [shape: bf16[288,128], index: 7, kind: input, shape index: {}]   ;;  %s1337_s6 = inlined_call_operand.vmem [shape: bf16[16,288], index: 6, kind: input, shape index: {}]   ;;  %s1338_s2 = inlined_call_operand.vmem [shape: f32[16,1], index: 2, kind: input, shape index: {}]   ;;  %s1339_s5 = inlined_call_operand.vmem [shape: f32[16,1], index: 5, kind: input, shape index: {}]   ;;  %s1340_s8 = inlined_call_operand.vmem [shape: f32[16,1], index: 8, kind: input, shape index: {}]   ;;  %s1341_s9 = inlined_call_operand.vmem [shape: bf16[16,16], index: 9, kind: input, shape index: {}]   ;;  %s1342_s10 = inlined_call_operand.vmem [shape: bf16[16,16], index: 10, kind: input, shape index: {}]   ;;  %s1343_s11 = inlined_call_operand.vmem [shape: bf16[16,16], index: 11, kind: input, shape index: {}]   ;;  %s1344_s12 = inlined_call_operand.vmem [shape: f32[16,128], index: 12, kind: input, shape index: {}]   ;;  %s1345_s13 = inlined_call_operand.vmem [shape: bf16[16,128], index: 13, kind: output, shape index: {}]  }
   0x1   :  { %954 = vmatprep.subr.bf16.mxu0 %v1061_v0  ;;  %v1011_v1 = vld [vmem:[%s1332_s1] sm:$0xff]   ;;  %958 = vmatprep.mubr.msk.bf16.mxu0 %vm1062_vm0, %v1061_v0  ;;  %v1014_v5 = vld [vmem:[%s1332_s1 + $0x8] sm:$0xff]   ;;  %v1018_v9 = vld [vmem:[%s1333_s4 + $0x50] sm:$0xff]   ;;  %vm661_vm2 = vcmask 130048  }
   0x2   :  { %v1012_v2 = vld [vmem:[%s1333_s4 + $0x40] sm:$0xff]   ;;  %1009 = vset.pattern.permute.xlu0 %v1063_v3  ;;  %1010 = vset.pattern.permute.xlu1 %v1063_v3  ;;  %v1015_v6 = vld [vmem:[%s1333_s4 + $0x48] sm:$0xff]   ;;  %v1020_v11 = vld [vmem:[%s1333_s4 + $0x10] sm:$0xff]  }
   0x3   :  { %955 = vmatpush3.bf16.msra.mxu0 %v1011_v1  ;;  %v1013_v4 = vld [vmem:[%s1333_s4] sm:$0xff]   ;;  %898 = vmatprep.subr.bf16.mxu1 %v1012_v2  ;;  %v1016_v7 = vld [vmem:[%s1333_s4 + $0x8] sm:$0xff]   ;;  %v1021_v12 = vld [vmem:[%s1333_s4 + $0x58] sm:$0xff]  }
   0x4   :  { %956 = vmatprep.subr.bf16.mxu0 %v1061_v0  ;;  %899 = vmatpush3.bf16.msra.mxu1 %v1013_v4  ;;  %v1017_v8 = vld [vmem:[%s1334_s0] sm:$0xff]   ;;  %v1022_v13 = vld [vmem:[%s1333_s4 + $0x88] sm:$0xff]   ;;  %v1023_v14 = vld [vmem:[%s1333_s4 + $0x18] sm:$0xff]  }
   0x5   :  { %900 = vmatprep.subr.bf16.mxu1 %v1015_v6  ;;  %v1019_v10 = vld [vmem:[%s1333_s4 + $0x80] sm:$0xff]   ;;  %v1024_v15 = vld [vmem:[%s1335_s3 + $0x8] ss:$12 sps:$4 sm:$0xff]   ;;  %v1037_v28 = vld [vmem:[%s1336_s7 + $0x58] sm:$0xff]  }
   0x6   :  { %v1025_v16 = vld [vmem:[%s1336_s7 + $0x40] sm:$0xff]   ;;  %v1029_v20 = vld [vmem:[%s1336_s7 + $0x48] sm:$0xff]   ;;  %v1033_v24 = vld [vmem:[%s1336_s7 + $0x50] sm:$0xff]  }
   0x7   :  { %957 = vmatpush3.bf16.msra.mxu0 %v1014_v5  ;;  %v1026_v17 = vld [vmem:[%s1333_s4 + $0x60] sm:$0xff]   ;;  %v1030_v21 = vld [vmem:[%s1333_s4 + $0x68] sm:$0xff]   ;;  %v1034_v25 = vld [vmem:[%s1333_s4 + $0x70] sm:$0xff]  }
   0x8   :  { %962 = vmatprep.subr.bf16.mxu0 %v1061_v0  ;;  %901 = vmatpush3.bf16.msra.mxu1 %v1016_v7  ;;  %v1027_v18 = vld [vmem:[%s1336_s7] sm:$0xff]   ;;  %v1031_v22 = vld [vmem:[%s1336_s7 + $0x8] sm:$0xff]   ;;  %v1035_v26 = vld [vmem:[%s1336_s7 + $0x10] sm:$0xff]  }
   0x9   :  { %902 = vmatprep.subr.bf16.mxu1 %v1018_v9  ;;  %v1028_v19 = vld [vmem:[%s1333_s4 + $0x20] sm:$0xff]   ;;  %v1032_v23 = vld [vmem:[%s1333_s4 + $0x28] sm:$0xff]   ;;  %v1036_v27 = vld [vmem:[%s1333_s4 + $0x30] sm:$0xff]  }
   0xa   :  { %959 = vmatmul.mubr.msk.bf16.vlgmr.msra.gmra.mrb[0].mxu0 %vm80_vm1, %v1017_v8  ;;  %v1038_v29 = vld [vmem:[%s1333_s4 + $0x78] sm:$0xff]   ;;  %v1041_v32 = vld [vmem:[%s1335_s3] ss:$12 sps:$4 sm:$0xff]   ;;  %v1043_v33 = vld [vmem:[%s1335_s3 + $0x4] ss:$12 sps:$4 sm:$0xff]  }
   0xb   :  { %963 = vmatpush3.bf16.msra.mxu0 %v1019_v10  ;;  %966 = vmatprep.mubr.msk.bf16.mxu0 %vm1062_vm0, %v1061_v0  ;;  %v1039_v30 = vld [vmem:[%s1336_s7 + $0x18] sm:$0xff]   ;;  %v1044_v34 = vld [vmem:[%s1336_s7 + $0x60] sm:$0xff]   ;;  %v1046_v36 = vld [vmem:[%s1336_s7 + $0x68] sm:$0xff]  }
   0xc   :  { %964 = vmatprep.subr.bf16.mxu0 %v1061_v0  ;;  %903 = vmatpush3.bf16.msra.mxu1 %v1020_v11  ;;  %v1040_v31 = vld [vmem:[%s1333_s4 + $0x38] sm:$0xff]   ;;  %v1045_v35 = vld [vmem:[%s1336_s7 + $0x20] sm:$0xff]   ;;  %v1047_v37 = vld [vmem:[%s1336_s7 + $0x28] sm:$0xff]  }
   0xd   :  { %904 = vmatprep.subr.bf16.mxu1 %v1021_v12  ;;  %337 = vmatprep.mubr.bf16.mxu1 %v1043_v33  ;;  %v1048_v38 = vld [vmem:[%s1336_s7 + $0x70] sm:$0xff]   ;;  %v1050_v40 = vld [vmem:[%s1336_s7 + $0x78] sm:$0xff]   ;;  %v51_v43 = vld [vmem:[%s1338_s2] sm:$0xff] }
   0xe   :  { %v1049_v39 = vld [vmem:[%s1336_s7 + $0x30] sm:$0xff]   ;;  %v1051_v42 = vld [vmem:[%s1336_s7 + $0x38] sm:$0xff]   ;;  %55 = vperm.xlu0 %1009, %v51_v43   ;;  %v167_v44 = vld [vmem:[%s1339_s5] sm:$0xff] }
   0xf   :  { %965 = vmatpush3.bf16.msra.mxu0 %v1022_v13  ;;  %v1054_v41 = vld [vmem:[%s1337_s6 + $0x4] ss:$12 sps:$4 sm:$0xff]   ;;  %v52_v45 = vld [vmem:[%s1338_s2 + $0x8] sm:$0xff]  ;;  %171 = vperm.xlu1 %1010, %v167_v44  }
  0x10   :  { %905 = vmatpush3.bf16.msra.mxu1 %v1023_v14  ;;  %923 = vmatprep.subr.bf16.mxu0 %v1025_v16  ;;  %v1052_v46 = vld [vmem:[%s1337_s6] ss:$12 sps:$4 sm:$0xff]   ;;  %v1057_v52 = vld [vmem:[%s1337_s6 + $0x8] ss:$12 sps:$4 sm:$0xff]  }
  0x11   :  { %906 = vmatprep.subr.bf16.mxu1 %v1026_v17  ;;  %v168_v47 = vld [vmem:[%s1339_s5 + $0x8] sm:$0xff]  ;;  %v1055_v48 = vld [vmem:[%s1336_s7 + $0x80] sm:$0xff]  }
  0x12   :  { %967 = vmatmul.mubr.msk.bf16.vlgmr.msra.gmra.mrb[4].mxu0 %vm80_vm1, %v1024_v15  ;;  %60 = vperm.xlu0 %1009, %v52_v45   ;;  %v429_v49 = vld [vmem:[%s1340_s8] sm:$0xff]  ;;  %v430_v50 = vld [vmem:[%s1340_s8 + $0x8] sm:$0xff] }
  0x13   :  { %924 = vmatpush3.bf16.msra.mxu0 %v1027_v18  ;;  %599 = vmatprep.mubr.bf16.mxu0 %v1054_v41  ;;  %v1056_v51 = vld [vmem:[%s1336_s7 + $0x88] sm:$0xff]   ;;  %v1058_v2 = vld [vmem:[%s1341_s9] sm:$0xff]  }
  0x14   :  { %907 = vmatpush3.bf16.msra.mxu1 %v1028_v19  ;;  %925 = vmatprep.subr.bf16.mxu0 %v1029_v20  ;;  %v1060_v41 = vld [vmem:[%s1343_s11] sm:$0xff]   ;;  %v652_v43 = vld [vmem:[%s1344_s12 + $0x8] sm:$0xff] }
  0x15   :  { %908 = vmatprep.subr.bf16.mxu1 %v1030_v21  ;;  %176 = vperm.xlu1 %1010, %v168_v47   ;;  %v1059_v21 = vld [vmem:[%s1342_s10] sm:$0xff]  }
  0x16   :  { %433 = vperm.xlu0 %1009, %v429_v49  }
  0x17   :  { %926 = vmatpush3.bf16.msra.mxu0 %v1031_v22 }
  0x18   :  { %909 = vmatpush3.bf16.msra.mxu1 %v1032_v23  ;;  %927 = vmatprep.subr.bf16.mxu0 %v1033_v24 }
  0x19   :  { %910 = vmatprep.subr.bf16.mxu1 %v1034_v25  ;;  %438 = vperm.xlu1 %1010, %v430_v50  }
  0x1b   :  { %928 = vmatpush3.bf16.msra.mxu0 %v1035_v26 }
  0x1c   :  { %911 = vmatpush3.bf16.msra.mxu1 %v1036_v27  ;;  %929 = vmatprep.subr.bf16.mxu0 %v1037_v28 }
  0x1d   :  { %912 = vmatprep.subr.bf16.mxu1 %v1038_v29 }
  0x1f   :  { %930 = vmatpush3.bf16.msra.mxu0 %v1039_v30 }
  0x20   :  { %913 = vmatpush3.bf16.msra.mxu1 %v1040_v31  ;;  %931 = vmatprep.subr.bf16.mxu0 %v1044_v34 }
  0x21   :  { %978 = vmatprep.subr.bf16.mxu1 %v1061_v0 }
  0x23   :  { %338 = vmatmul.mubr.bf16.vlgmr.msra.gmra.mrb[0].mxu1 %v1041_v32  ;;  %932 = vmatpush3.bf16.msra.mxu0 %v1045_v35 }
  0x24   :  { %933 = vmatprep.subr.bf16.mxu0 %v1046_v36  ;;  %980 = vmatprep.mubr.msk.bf16.mxu1 %vm1062_vm0, %v1061_v0 }
  0x27   :  { %934 = vmatpush3.bf16.msra.mxu0 %v1047_v37 }
  0x28   :  { %935 = vmatprep.subr.bf16.mxu0 %v1048_v38 }
  0x2b   :  { %936 = vmatpush3.bf16.msra.mxu0 %v1049_v39 }
  0x2c   :  { %937 = vmatprep.subr.bf16.mxu0 %v1050_v40 }
  0x2f   :  { %938 = vmatpush3.bf16.msra.mxu0 %v1051_v42 }
  0x30   :  { %970 = vmatprep.subr.bf16.mxu0 %v1061_v0 }
  0x32   :  { %600 = vmatmul.mubr.bf16.vlgmr.msra.gmra.mrb[8].mxu0 %v1052_v46 }
  0x33   :  { %971 = vmatpush3.bf16.msra.mxu0 %v1055_v48  ;;  %974 = vmatprep.mubr.msk.bf16.mxu0 %vm1062_vm0, %v1061_v0 }
  0x34   :  { %972 = vmatprep.subr.bf16.mxu0 %v1061_v0 }
  0x37   :  { %973 = vmatpush3.bf16.msra.mxu0 %v1056_v51 }
  0x3a   :  { %975 = vmatmul.mubr.msk.bf16.vlgmr.msra.gmra.mrb[12].mxu0 %vm80_vm1, %v1057_v52 }
  0x8d   :  { %v56_v53 = vpop.permute.xlu0 %55 }
  0x8e   :  { %v172_v6 = vpop.permute.xlu1 %171 }
  0x91   :  { %v61_v55 = vpop.permute.xlu0 %60 }
  0x94   :  { %v177_v14 = vpop.permute.xlu1 %176 }
  0x95   :  { %v434_v28 = vpop.permute.xlu0 %433 }
  0x98   :  { %v439_v30 = vpop.permute.xlu1 %438 }
  0xdd   :  { %v118_v54 = vpop.f32.mrb[0].mxu0 }
  0xde   :  { %v119_v56 = vadd.f32 %v118_v54, %v56_v53  ;;  %v960_v57 = vpop.f32.mrb[1].mxu0 }
  0xdf   :  { %v121_v58 = vpop.f32.mrb[2].mxu0 }
  0xe0   :  { %v125_v59 = vmax.f32 %v119_v56, 0.0  ;;  %v122_v60 = vadd.f32 %v121_v58, %v61_v55  ;;  %v961_v61 = vpop.f32.mrb[3].mxu0 }
  0xe2   :  { %v126_v62 = vmax.f32 %v122_v60, 0.0 }
  0xe4   :  { %v655_v63 = vpack.c.bf16 %v126_v62, %v125_v59 }
  0xe5   :  { %v380_v1 = vpop.f32.mrb[4].mxu0 }
  0xe6   :  { %v968_v3 = vpop.f32.mrb[5].mxu0  ;;  %979 = vmatpush3.bf16.msra.mxu1 %v655_v63 }
  0xe7   :  { %v383_v4 = vpop.f32.mrb[6].mxu0  ;;  %984 = vmatprep.subr.bf16.mxu1 %v1061_v0 }
  0xe8   :  { %v969_v5 = vpop.f32.mrb[7].mxu0 }
  0xe9   :  { %981 = vmatmul.mubr.msk.bf16.vlgmr.msra.gmra.mrb[4].mxu1 %vm661_vm2, %v1058_v2 }
  0xea   :  { %986 = vmatprep.mubr.msk.bf16.mxu1 %vm1062_vm0, %v1061_v0 }
  0xf6   :  { %v914_v7 = vpop.f32.mrb[0].mxu1 }
  0xf7   :  { %v915_v8 = vpop.f32.mrb[1].mxu1 }
  0xf8   :  { %v916_v9 = vadd.f32 %v915_v8, %v914_v7  ;;  %v917_v10 = vpop.f32.mrb[2].mxu1 }
  0xf9   :  { %v918_v11 = vpop.f32.mrb[3].mxu1 }
  0xfa   :  { %v340_v12 = vadd.f32 %v916_v9, %v172_v6  ;;  %v919_v13 = vadd.f32 %v918_v11, %v917_v10 }
  0xfc   :  { %v381_v15 = vadd.f32 %v380_v1, %v340_v12  ;;  %v343_v16 = vadd.f32 %v919_v13, %v177_v14 }
  0xfe   :  { %v384_v17 = vadd.f32 %v383_v4, %v343_v16  ;;  %v387_v18 = vmax.f32 %v381_v15, 0.0 }
 0x100   :  { %v388_v19 = vmax.f32 %v384_v17, 0.0 }
 0x102   :  { %v710_v20 = vpack.c.bf16 %v388_v19, %v387_v18 }
 0x104   :  { %985 = vmatpush3.bf16.msra.mxu1 %v710_v20 }
 0x105   :  { %v939_v22 = vpop.f32.mrb[8].mxu0  ;;  %990 = vmatprep.subr.bf16.mxu1 %v1061_v0 }
 0x106   :  { %v940_v23 = vpop.f32.mrb[9].mxu0 }
 0x107   :  { %v941_v24 = vadd.f32 %v940_v23, %v939_v22  ;;  %v942_v25 = vpop.f32.mrb[10].mxu0  ;;  %987 = vmatmul.mubr.msk.bf16.vlgmr.msra.gmra.mrb[4].mxu1 %vm661_vm2, %v1059_v21 }
 0x108   :  { %v943_v26 = vpop.f32.mrb[11].mxu0  ;;  %992 = vmatprep.mubr.msk.bf16.mxu1 %vm1062_vm0, %v1061_v0  ;;  %v651_v0 = vld [vmem:[%s1344_s12] sm:$0xff] }
 0x109   :  { %v944_v27 = vadd.f32 %v943_v26, %v942_v25  ;;  %v602_v29 = vadd.f32 %v941_v24, %v434_v28 }
 0x10b   :  { %v605_v34 = vadd.f32 %v944_v27, %v439_v30 }
 0x10d   :  { %v642_v31 = vpop.f32.mrb[12].mxu0 }
 0x10e   :  { %v643_v32 = vadd.f32 %v642_v31, %v602_v29  ;;  %v976_v33 = vpop.f32.mrb[13].mxu0 }
 0x10f   :  { %v645_v35 = vpop.f32.mrb[14].mxu0 }
 0x110   :  { %v646_v36 = vadd.f32 %v645_v35, %v605_v34  ;;  %v977_v37 = vpop.f32.mrb[15].mxu0  ;;  %v649_v38 = vmax.f32 %v643_v32, 0.0 }
 0x112   :  { %v650_v39 = vmax.f32 %v646_v36, 0.0 }
 0x114   :  { %v764_v40 = vpack.c.bf16 %v650_v39, %v649_v38 }
 0x116   :  { %991 = vmatpush3.bf16.msra.mxu1 %v764_v40 }
 0x119   :  { %993 = vmatmul.mubr.msk.bf16.vlgmr.msra.gmra.mrb[4].mxu1 %vm661_vm2, %v1060_v41 }
 0x1ec   :  { %v807_v42 = vpop.f32.mrb[4].mxu1 }
 0x1ed   :  { %v996_v44 = vadd.f32 %v807_v42, %v651_v0  ;;  %v994_v45 = vpop.f32.mrb[5].mxu1 }
 0x1ee   :  { %v810_v46 = vpop.f32.mrb[6].mxu1 }
 0x1ef   :  { %v997_v47 = vadd.f32 %v810_v46, %v652_v43  ;;  %v995_v48 = vpop.f32.mrb[7].mxu1  ;;  %v816_v49 = vmax.f32 %v996_v44, 0.0 }
 0x1f1   :  { %v817_v50 = vmax.f32 %v997_v47, 0.0 }
 0x1f3   :  { %v893_v51 = vpack.c.bf16 %v817_v50, %v816_v49 }
 0x1f5   :  { %894 = vst [vmem:[%s1345_s13] sm:$0xff] %v893_v51  }

// kernel: _lambda_.10
= control target key start
LH: loop header
LB: loop body
LE: loop exit
PB: predicated region body
PF: predicated region fallthrough
CT: control target
= control target key end

     0   :  { %v490_v0 = vmov 0   ;;  %vm131_vm0 = vcmask 130048   ;;  %v491_v15 = vmov 0.0   ;;  %vm492_vm1 = vmmov 0   ;;  %s661_s1 = inlined_call_operand.vmem [shape: bf16[144,128], index: 1, kind: input, shape index: {}]   ;;  %s662_s0 = inlined_call_operand.vmem [shape: bf16[16,144], index: 0, kind: input, shape index: {}]   ;;  %s663_s2 = inlined_call_operand.vmem [shape: f32[16,1], index: 2, kind: input, shape index: {}]   ;;  %s664_s9 = inlined_call_operand.vmem [shape: f32[8,1], index: 9, kind: input, shape index: {}]   ;;  %s665_s6 = inlined_call_operand.vmem [shape: bf16[144,128], index: 6, kind: input, shape index: {}]   ;;  %s666_s7 = inlined_call_operand.vmem [shape: f32[8,1], index: 7, kind: input, shape index: {}]   ;;  %s667_s4 = inlined_call_operand.vmem [shape: f32[8,1], index: 4, kind: input, shape index: {}]   ;;  %s668_s5 = inlined_call_operand.vmem [shape: bf16[8,144], index: 5, kind: input, shape index: {}]   ;;  %s669_s3 = inlined_call_operand.vmem [shape: bf16[8,16], index: 3, kind: input, shape index: {}]   ;;  %s670_s10 = inlined_call_operand.vmem [shape: f32[16,128], index: 10, kind: output, shape index: {}]   ;;  %s671_s8 = inlined_call_operand.vmem [shape: bf16[8,8], index: 8, kind: input, shape index: {}]  }
   0x1   :  { %135 = vmatprep.subr.bf16.mxu0 %v490_v0  ;;  %v467_v1 = vld [vmem:[%s661_s1] sm:$0xff]   ;;  %465 = vset.pattern.permute.xlu0 %v490_v0  ;;  %v468_v2 = vld [vmem:[%s661_s1 + $0x8] sm:$0xff]   ;;  %v469_v3 = vld [vmem:[%s661_s1 + $0x10] sm:$0xff]   ;;  %vm370_vm2 = vcmask 1043456   ;;  %vm366_vm3 = vcmask 64512  }
   0x2   :  { %466 = vset.pattern.permute.xlu1 %v490_v0  ;;  %136 = vmatpush1.bf16.msra.mxu0 %v467_v1  ;;  %v470_v4 = vld [vmem:[%s661_s1 + $0x18] sm:$0xff]   ;;  %v478_v5 = vld [vmem:[%s662_s0 + $0x4] ss:$8 sps:$4 sm:$0xff]   ;;  %v473_v11 = vld [vmem:[%s661_s1 + $0x30] sm:$0xff]  }
   0x3   :  { %137 = vmatprep.subr.bf16.mxu0 %v490_v0  ;;  %v56_v6 = vld [vmem:[%s663_s2] sm:$0xff]  ;;  %431 = vmatprep.mubr.msk.bf16.mxu0 %vm131_vm0, %v478_v5  ;;  %v57_v7 = vld [vmem:[%s663_s2 + $0x8] sm:$0xff]  ;;  %v474_v12 = vld [vmem:[%s661_s1 + $0x38] sm:$0xff]  }
   0x4   :  { %60 = vperm.xlu0 %465, %v56_v6   ;;  %v471_v8 = vld [vmem:[%s661_s1 + $0x20] sm:$0xff]   ;;  %v472_v10 = vld [vmem:[%s661_s1 + $0x28] sm:$0xff]   ;;  %450 = vmatprep.subr.bf16.mxu1 %v491_v15  ;;  %v481_v34 = vld [vmem:[%s665_s6 + $0x10] sm:$0xff]  }
   0x5   :  { %v360_v9 = vld [vmem:[%s664_s9] sm:$0xff]  ;;  %452 = vmatprep.mubr.msk.bf16.mxu1 %vm492_vm1, %v491_v15  ;;  %v480_v33 = vld [vmem:[%s665_s6 + $0x8] sm:$0xff]   ;;  %v482_v35 = vld [vmem:[%s665_s6 + $0x18] sm:$0xff]  }
   0x6   :  { %138 = vmatpush1.bf16.msra.mxu0 %v468_v2  ;;  %v475_v13 = vld [vmem:[%s661_s1 + $0x40] sm:$0xff]   ;;  %v484_v37 = vld [vmem:[%s665_s6 + $0x28] sm:$0xff]   ;;  %v485_v38 = vld [vmem:[%s665_s6 + $0x30] sm:$0xff]  }
   0x7   :  { %139 = vmatprep.subr.bf16.mxu0 %v490_v0  ;;  %v476_v14 = vld [vmem:[%s662_s0] ss:$8 sps:$4 sm:$0xff]   ;;  %v486_v39 = vld [vmem:[%s665_s6 + $0x38] sm:$0xff]  }
   0x8   :  { %65 = vperm.xlu0 %465, %v57_v7   ;;  %v248_v16 = vld [vmem:[%s666_s7] sm:$0xff] }
   0x9   :  { %251 = vperm.xlu1 %466, %v248_v16   ;;  %v180_v17 = vld [vmem:[%s667_s4] sm:$0xff] }
   0xa   :  { %140 = vmatpush1.bf16.msra.mxu0 %v469_v3  ;;  %v229_v28 = vld [vmem:[%s668_s5] sm:$0xff] }
   0xb   :  { %141 = vmatprep.subr.bf16.mxu0 %v490_v0  ;;  %v178_v30 = vld [vmem:[%s669_s3] sm:$0xf]  ;;  %v434_v32 = vcombine.high %v229_v28, %v229_v28  ;;  %v433_v41 = vcombine.low %v229_v28, %v229_v28 }
   0xc   :  { %363 = vperm.xlu0 %465, %v360_v9   ;;  %v479_v31 = vld [vmem:[%s665_s6] sm:$0xff]  }
   0xd   :  { %183 = vperm.xlu1 %466, %v180_v17   ;;  %v483_v36 = vld [vmem:[%s665_s6 + $0x20] sm:$0xff]  }
   0xe   :  { %142 = vmatpush1.bf16.msra.mxu0 %v470_v4  ;;  %v487_v40 = vld [vmem:[%s665_s6 + $0x40] sm:$0xff]  }
   0xf   :  { %143 = vmatprep.subr.bf16.mxu0 %v490_v0  ;;  %v358_v57 = vld [vmem:[%s671_s8] sm:$0xf] }
  0x12   :  { %144 = vmatpush1.bf16.msra.mxu0 %v471_v8 }
  0x13   :  { %145 = vmatprep.subr.bf16.mxu0 %v490_v0 }
  0x16   :  { %146 = vmatpush1.bf16.msra.mxu0 %v472_v10 }
  0x17   :  { %147 = vmatprep.subr.bf16.mxu0 %v490_v0 }
  0x1a   :  { %148 = vmatpush1.bf16.msra.mxu0 %v473_v11 }
  0x1b   :  { %149 = vmatprep.subr.bf16.mxu0 %v490_v0 }
  0x1e   :  { %150 = vmatpush1.bf16.msra.mxu0 %v474_v12 }
  0x1f   :  { %151 = vmatprep.subr.bf16.mxu0 %v490_v0 }
  0x22   :  { %152 = vmatpush1.bf16.msra.mxu0 %v475_v13 }
  0x23   :  { %456 = vmatprep.subr.bf16.mxu0 %v491_v15 }
  0x25   :  { %168 = vmatmul.mubr.bf16.vlgmr.msra.gmra.mrb[0].mxu0 %v476_v14 }
  0x26   :  { %458 = vmatprep.mubr.msk.bf16.mxu0 %vm492_vm1, %v491_v15 }
  0x83   :  { %v61_v18 = vpop.permute.xlu0 %60 }
  0x87   :  { %v66_v22 = vpop.permute.xlu0 %65 }
  0x88   :  { %v252_v42 = vpop.permute.xlu1 %251 }
  0x8b   :  { %v364_v58 = vpop.permute.xlu0 %363 }
  0x8c   :  { %v184_v43 = vpop.permute.xlu1 %183 }
  0xf8   :  { %v169_v19 = vpop.f32.mrb[0].mxu0 }
  0xf9   :  { %v170_v20 = vadd.f32 %v169_v19, %v61_v18  ;;  %v171_v21 = vpop.f32.mrb[1].mxu0 }
  0xfa   :  { %v172_v23 = vpop.f32.mrb[2].mxu0 }
  0xfb   :  { %v173_v24 = vadd.f32 %v172_v23, %v66_v22  ;;  %v174_v25 = vpop.f32.mrb[3].mxu0  ;;  %v176_v26 = vmax.f32 %v170_v20, 0.0 }
  0xfd   :  { %v177_v27 = vmax.f32 %v173_v24, 0.0 }
  0xff   :  { %v179_v29 = vpack.c.bf16 %v177_v27, %v176_v26 }
 0x101   :  { %451 = vmatpush3.bf16.msra.mxu1 %v179_v29 }
 0x102   :  { %317 = vmatprep.subr.bf16.mxu1 %v490_v0 }
 0x104   :  { %453 = vmatmul.mubr.msk.bf16.vlgmr.msra.gmra.mrb[0].mxu1 %vm131_vm0, %v178_v30 }
 0x105   :  { %318 = vmatpush1.bf16.msra.mxu1 %v479_v31  ;;  %444 = vmatprep.mubr.msk.bf16.mxu1 %vm131_vm0, %v434_v32 }
 0x106   :  { %319 = vmatprep.subr.bf16.mxu1 %v490_v0 }
 0x109   :  { %320 = vmatpush1.bf16.msra.mxu1 %v480_v33 }
 0x10a   :  { %321 = vmatprep.subr.bf16.mxu1 %v490_v0 }
 0x10d   :  { %322 = vmatpush1.bf16.msra.mxu1 %v481_v34 }
 0x10e   :  { %323 = vmatprep.subr.bf16.mxu1 %v490_v0 }
 0x111   :  { %324 = vmatpush1.bf16.msra.mxu1 %v482_v35 }
 0x112   :  { %325 = vmatprep.subr.bf16.mxu1 %v490_v0 }
 0x115   :  { %326 = vmatpush1.bf16.msra.mxu1 %v483_v36 }
 0x116   :  { %327 = vmatprep.subr.bf16.mxu1 %v490_v0 }
 0x119   :  { %328 = vmatpush1.bf16.msra.mxu1 %v484_v37 }
 0x11a   :  { %329 = vmatprep.subr.bf16.mxu1 %v490_v0 }
 0x11d   :  { %330 = vmatpush1.bf16.msra.mxu1 %v485_v38 }
 0x11e   :  { %331 = vmatprep.subr.bf16.mxu1 %v490_v0 }
 0x121   :  { %332 = vmatpush1.bf16.msra.mxu1 %v486_v39 }
 0x122   :  { %333 = vmatprep.subr.bf16.mxu1 %v490_v0 }
 0x125   :  { %334 = vmatpush1.bf16.msra.mxu1 %v487_v40 }
 0x128   :  { %350 = vmatmul.mubr.bf16.vlgmr.msra.gmra.mrb[4].mxu1 %v433_v41 }
 0x1d7   :  { %v223_v44 = vpop.f32.mrb[0].mxu1 }
 0x1d8   :  { %v224_v45 = vadd.f32 %v223_v44, %v184_v43  ;;  %v454_v46 = vpop.f32.mrb[1].mxu1 }
 0x1d9   :  { %v226_v47 = vpop.f32.mrb[2].mxu1 }
 0x1da   :  { %414 = vst [vmem:[%s670_s10] sm:$0xff] %v224_v45  ;;  %v455_v48 = vpop.f32.mrb[3].mxu1 }
 0x1fb   :  { %v351_v49 = vpop.f32.mrb[4].mxu1 }
 0x1fc   :  { %v352_v50 = vadd.f32 %v351_v49, %v252_v42  ;;  %v353_v51 = vpop.f32.mrb[5].mxu1 }
 0x1fd   :  { %v354_v52 = vpop.f32.mrb[6].mxu1 }
 0x1fe   :  { %v357_v53 = vmax.f32 %v352_v50, 0.0  ;;  %v355_v54 = vpop.f32.mrb[7].mxu1 }
 0x200   :  { %v359_v55 = vpack.c.bf16 %v357_v53, %v357_v53 }
 0x202   :  { %v372_v56 = vsel %vm370_vm2, %v359_v55, 0 }
 0x203   :  { %457 = vmatpush3.bf16.msra.mxu0 %v372_v56 }
 0x206   :  { %459 = vmatmul.mubr.msk.bf16.vlgmr.msra.gmra.mrb[4].mxu0 %vm366_vm3, %v358_v57 }
 0x2d9   :  { %v408_v59 = vpop.f32.mrb[4].mxu0 }
 0x2da   :  { %v409_v60 = vadd.f32 %v408_v59, %v364_v58  ;;  %v460_v61 = vpop.f32.mrb[5].mxu0 }
 0x2db   :  { %v411_v62 = vpop.f32.mrb[6].mxu0 }
 0x2dc   :  { %415 = vst [vmem:[%s670_s10 + $0x8] sm:$0xff] %v409_v60  ;;  %v461_v63 = vpop.f32.mrb[7].mxu0 }

// kernel: _lambda_.11
= control target key start
LH: loop header
LB: loop body
LE: loop exit
PB: predicated region body
PF: predicated region fallthrough
CT: control target
= control target key end

     0   :  { %s760_s12 = smov 0   ;;  %s762_s13 = smov 0   ;;  %s1000_s0 = inlined_call_operand.vmem [shape: f32[32,64], index: 0, kind: input, shape index: {}]   ;;  %s1001_s1 = inlined_call_operand.vmem [shape: f32[64,1024], index: 1, kind: input, shape index: {}]   ;;  %s1002_s2 = inlined_call_operand.vmem [shape: f32[32,1], index: 2, kind: input, shape index: {}]   ;;  %s1003_s3 = inlined_call_operand.vmem [shape: f32[32,1024], index: 3, kind: output, shape index: {}]  }
   0x1   :  { %s764_s14 = smov 0  }
   0x2 LB: > { %s629_s15 = sadd.s32 4294967295, %s736_s14   ;;  %s777_s16 = sadd.s32 1, %s736_s14   ;;  %s736_s14 = sphi %s764_s14, %s1007_s14   ;;  %s732_s13 = sphi %s762_s13, %s1006_s13   ;;  %s728_s12 = sphi %s760_s12, %s1005_s12  }
   0x3   : > { %s38_s17 = ssub.s32 %s736_s14, %s777_s16  ;;  %s41_s18 = sadd.s32 1, %s732_s13 }
   0x4   : > { %p39_p0 = scmp.eq.s32.totalorder %s38_s17, 0  ;;  %p48_p1 = scmp.ne.s32.totalorder %s732_s13, %s728_s12 }
   0x5   : > { %p49_p2 = scmp.eq.s32.totalorder %s736_s14, 0  ;;  %p99_p3 = scmp.eq.s32.totalorder %s629_s15, 1 }
   0x6   : > { %s788_s19 = scalar_select %p39_p0, %s732_s13, %s41_s18  }
   0x7   : > { %p50_p4 = por %p49_p2, %p48_p1  ;;  %p790_p5 = por %p99_p3, %p48_p1 }
   0x8   : > { %p632_p6 = scmp.ge.s32.totalorder %s736_s14, 2 }
   0xa   : > { %127 = sbr.rel (%p632_p6) target bundleno = 37 (0x25), region = 24 }
  0x11   : > { %130 = sbr.rel (!%p50_p4) target bundleno = 37 (0x25), region = 28  ;;  %s132_s21 = sand.u32 (%p50_p4), 1, %s732_s13  }
  0x12   : > { %s652_s22 = sshll.u32 (%p50_p4), %s736_s14, 5  ;;  %s633_s23 = sshll.u32 (%p50_p4), %s132_s21, 8 }
  0x13   : > { %s800_s26 = scalar_lea.vmem (%p50_p4), %s1001_s1, %s652_s22  ;;  %s805_s27 = scalar_lea.vmem (%p50_p4), [#allocation2], %s633_s23 }
  0x14   : > { %v150_v0 = vld [vmem:[%s800_s26] sm:$0xff] (%p50_p4)  ;;  %v152_v1 = vld [vmem:[%s800_s26 + $0x8] sm:$0xff] (%p50_p4)  ;;  %v154_v2 = vld [vmem:[%s800_s26 + $0x10] sm:$0xff] (%p50_p4) }
  0x15   : > { %151 = vst [vmem:[%s805_s27] sm:$0xff] (%p50_p4), %v150_v0  ;;  %153 = vst [vmem:[%s805_s27 + $0x8] sm:$0xff] (%p50_p4), %v152_v1  ;;  %v156_v3 = vld [vmem:[%s800_s26 + $0x18] sm:$0xff] (%p50_p4)  ;;  %v158_v4 = vld [vmem:[%s800_s26 + $0x40] sm:$0xff] (%p50_p4) }
  0x16   : > { %155 = vst [vmem:[%s805_s27 + $0x10] sm:$0xff] (%p50_p4), %v154_v2  ;;  %v160_v5 = vld [vmem:[%s800_s26 + $0x48] sm:$0xff] (%p50_p4)  ;;  %157 = vst [vmem:[%s805_s27 + $0x18] sm:$0xff] (%p50_p4), %v156_v3  ;;  %v162_v6 = vld [vmem:[%s800_s26 + $0x50] sm:$0xff] (%p50_p4) }
  0x17   : > { %159 = vst [vmem:[%s805_s27 + $0x20] sm:$0xff] (%p50_p4), %v158_v4  ;;  %161 = vst [vmem:[%s805_s27 + $0x28] sm:$0xff] (%p50_p4), %v160_v5  ;;  %v164_v7 = vld [vmem:[%s800_s26 + $0x58] sm:$0xff] (%p50_p4)  ;;  %v166_v8 = vld [vmem:[%s800_s26 + $0x80] sm:$0xff] (%p50_p4) }
  0x18   : > { %163 = vst [vmem:[%s805_s27 + $0x30] sm:$0xff] %v162_v6  ;;  %165 = vst [vmem:[%s805_s27 + $0x38] sm:$0xff] %v164_v7  ;;  %v168_v9 = vld [vmem:[%s800_s26 + $0x88] sm:$0xff]  ;;  %v170_v10 = vld [vmem:[%s800_s26 + $0x90] sm:$0xff] }
  0x19   : > { %167 = vst [vmem:[%s805_s27 + $0x40] sm:$0xff] %v166_v8  ;;  %v172_v11 = vld [vmem:[%s800_s26 + $0x98] sm:$0xff]  ;;  %169 = vst [vmem:[%s805_s27 + $0x48] sm:$0xff] %v168_v9  ;;  %v174_v12 = vld [vmem:[%s800_s26 + $0xc0] sm:$0xff] }
  0x1a   : > { %171 = vst [vmem:[%s805_s27 + $0x50] sm:$0xff] %v170_v10  ;;  %173 = vst [vmem:[%s805_s27 + $0x58] sm:$0xff] %v172_v11  ;;  %v176_v13 = vld [vmem:[%s800_s26 + $0xc8] sm:$0xff]  ;;  %v178_v14 = vld [vmem:[%s800_s26 + $0xd0] sm:$0xff] }
  0x1b   : > { %175 = vst [vmem:[%s805_s27 + $0x60] sm:$0xff] %v174_v12  ;;  %177 = vst [vmem:[%s805_s27 + $0x68] sm:$0xff] %v176_v13  ;;  %v180_v15 = vld [vmem:[%s800_s26 + $0xd8] sm:$0xff]  ;;  %v182_v16 = vld [vmem:[%s800_s26 + $0x100] sm:$0xff] }
  0x1c   : > { %179 = vst [vmem:[%s805_s27 + $0x70] sm:$0xff] %v178_v14  ;;  %v184_v17 = vld [vmem:[%s800_s26 + $0x108] sm:$0xff]  ;;  %181 = vst [vmem:[%s805_s27 + $0x78] sm:$0xff] %v180_v15  ;;  %v186_v18 = vld [vmem:[%s800_s26 + $0x110] sm:$0xff] }
  0x1d   : > { %183 = vst [vmem:[%s805_s27 + $0x80] sm:$0xff] %v182_v16  ;;  %185 = vst [vmem:[%s805_s27 + $0x88] sm:$0xff] %v184_v17  ;;  %v188_v19 = vld [vmem:[%s800_s26 + $0x118] sm:$0xff]  ;;  %v190_v20 = vld [vmem:[%s800_s26 + $0x140] sm:$0xff] }
  0x1e   : > { %187 = vst [vmem:[%s805_s27 + $0x90] sm:$0xff] %v186_v18  ;;  %189 = vst [vmem:[%s805_s27 + $0x98] sm:$0xff] %v188_v19  ;;  %v192_v21 = vld [vmem:[%s800_s26 + $0x148] sm:$0xff]  ;;  %v194_v22 = vld [vmem:[%s800_s26 + $0x150] sm:$0xff] }
  0x1f   : > { %191 = vst [vmem:[%s805_s27 + $0xa0] sm:$0xff] %v190_v20  ;;  %v196_v23 = vld [vmem:[%s800_s26 + $0x158] sm:$0xff]  ;;  %193 = vst [vmem:[%s805_s27 + $0xa8] sm:$0xff] %v192_v21  ;;  %v198_v24 = vld [vmem:[%s800_s26 + $0x180] sm:$0xff] }
  0x20   : > { %195 = vst [vmem:[%s805_s27 + $0xb0] sm:$0xff] %v194_v22  ;;  %197 = vst [vmem:[%s805_s27 + $0xb8] sm:$0xff] %v196_v23  ;;  %v200_v25 = vld [vmem:[%s800_s26 + $0x188] sm:$0xff]  ;;  %v202_v26 = vld [vmem:[%s800_s26 + $0x190] sm:$0xff] }
  0x21   : > { %199 = vst [vmem:[%s805_s27 + $0xc0] sm:$0xff] %v198_v24  ;;  %201 = vst [vmem:[%s805_s27 + $0xc8] sm:$0xff] %v200_v25  ;;  %v204_v27 = vld [vmem:[%s800_s26 + $0x198] sm:$0xff]  ;;  %v206_v28 = vld [vmem:[%s800_s26 + $0x1c0] sm:$0xff] }
  0x22   : > { %203 = vst [vmem:[%s805_s27 + $0xd0] sm:$0xff] %v202_v26  ;;  %v208_v29 = vld [vmem:[%s800_s26 + $0x1c8] sm:$0xff]  ;;  %205 = vst [vmem:[%s805_s27 + $0xd8] sm:$0xff] %v204_v27  ;;  %v210_v30 = vld [vmem:[%s800_s26 + $0x1d0] sm:$0xff] }
  0x23   : > { %207 = vst [vmem:[%s805_s27 + $0xe0] sm:$0xff] %v206_v28  ;;  %209 = vst [vmem:[%s805_s27 + $0xe8] sm:$0xff] %v208_v29  ;;  %v212_v31 = vld [vmem:[%s800_s26 + $0x1d8] sm:$0xff] }
  0x24   : > { %211 = vst [vmem:[%s805_s27 + $0xf0] sm:$0xff] %v210_v30  ;;  %213 = vst [vmem:[%s805_s27 + $0xf8] sm:$0xff] %v212_v31 }
  0x25 PF: > { %p636_p7 = scmp.ge.s32.totalorder %s736_s14, 1  ;;  %p218_p8 = scmp.lt.s32.totalorder %s736_s14, 3 }
  0x27   : > { %p219_p9 = pnand %p636_p7, %p218_p8 }
  0x28   : > { %s225_s28 = sand.u32 (!%p219_p9), 1, %s728_s12   ;;  %v738_v32 = vmov (!%p219_p9), 0.0   ;;  %v285_v33 = vld [vmem:[%s1002_s2] sm:$0xff] (!%p219_p9)  ;;  %v739_v34 = vmov (!%p219_p9), 0   ;;  %v287_v35 = vld [vmem:[%s1002_s2 + $0x10] sm:$0xff] (!%p219_p9)  ;;  %v286_v39 = vld [vmem:[%s1002_s2 + $0x8] sm:$0xff] (!%p219_p9) }
  0x29   : > { %222 = sbr.rel (%p219_p9) target bundleno = 300 (0x12c), region = 51  ;;  %s637_s29 = sshll.u32 (!%p219_p9), %s225_s28, 8  ;;  %386 = vmatprep.mubr.f32.mxu0 (!%p219_p9), %v738_v32  ;;  %475 = vmatprep.mubr.f32.mxu1 (!%p219_p9), %v738_v32  ;;  %v288_v49 = vld [vmem:[%s1002_s2 + $0x18] sm:$0xff] (!%p219_p9)  ;;  %v249_v22 = vld [vmem:[%s1000_s0] sm:$0xff] (!%p219_p9)  ;;  %vm309_vm0 = vcmask (!%p219_p9), 523264   ;;  %v250_v23 = vld [vmem:[%s1000_s0 + $0x8] sm:$0xff] (!%p219_p9) }
  0x2a   : > { %712 = vset.pattern.permute.xlu0 (!%p219_p9), %v739_v34  ;;  %713 = vset.pattern.permute.xlu1 (!%p219_p9), %v739_v34  ;;  %s881_s7 = scalar_lea.vmem (!%p219_p9), [#allocation2], %s637_s29  ;;  %v251_v24 = vld [vmem:[%s1000_s0 + $0x10] sm:$0xff] (!%p219_p9)  ;;  %v252_v25 = vld [vmem:[%s1000_s0 + $0x18] sm:$0xff] (!%p219_p9)  ;;  %s638_s27 = sshll.u32 (!%p219_p9), %s225_s28, 7 }
  0x2b   : > { %v254_v36 = vld [vmem:[%s881_s7 + $0x8] sm:$0xff] (!%p219_p9)  ;;  %v256_v38 = vld [vmem:[%s881_s7 + $0x18] sm:$0xff] (!%p219_p9)  ;;  %291 = vperm.xlu0 (!%p219_p9), %712, %v285_v33   ;;  %301 = vperm.xlu1 (!%p219_p9), %713, %v287_v35   ;;  %v253_v42 = vld [vmem:[%s881_s7] sm:$0xff] (!%p219_p9)  ;;  %s949_s29 = scalar_lea.vmem (!%p219_p9), [#allocation3], %s638_s27 }
  0x2c   : > { %v258_v37 = vld [vmem:[%s881_s7 + $0x28] sm:$0xff] (!%p219_p9)  ;;  %v260_v41 = vld [vmem:[%s881_s7 + $0x38] sm:$0xff] (!%p219_p9)  ;;  %v257_v43 = vld [vmem:[%s881_s7 + $0x20] sm:$0xff] (!%p219_p9) }
  0x2d   : > { %v654_v40 = vpack.c.bf16 (!%p219_p9), %v258_v37, %v254_v36  ;;  %v670_v44 = vpack.c.bf16 (!%p219_p9), %v260_v41, %v256_v38  ;;  %v656_v45 = vpack.c.bf16 (!%p219_p9), %v257_v43, %v253_v42  ;;  %v255_v46 = vld [vmem:[%s881_s7 + $0x10] sm:$0xff] (!%p219_p9)  ;;  %v262_v48 = vld [vmem:[%s881_s7 + $0x48] sm:$0xff] (!%p219_p9)  ;;  %v264_v52 = vld [vmem:[%s881_s7 + $0x58] sm:$0xff] (!%p219_p9) }
  0x2e   : > { %v259_v47 = vld [vmem:[%s881_s7 + $0x30] sm:$0xff] (!%p219_p9)  ;;  %v266_v51 = vld [vmem:[%s881_s7 + $0x68] sm:$0xff] (!%p219_p9)  ;;  %v268_v53 = vld [vmem:[%s881_s7 + $0x78] sm:$0xff] (!%p219_p9) }
  0x2f   : > { %655 = vmatprep.subr.bf16.mxu0 (!%p219_p9), %v654_v40  ;;  %v672_v50 = vpack.c.bf16 (!%p219_p9), %v259_v47, %v255_v46  ;;  %671 = vmatprep.subr.bf16.mxu1 (!%p219_p9), %v670_v44  ;;  %v658_v54 = vpack.c.bf16 (!%p219_p9), %v266_v51, %v262_v48  ;;  %v674_v55 = vpack.c.bf16 (!%p219_p9), %v268_v53, %v264_v52  ;;  %v261_v56 = vld [vmem:[%s881_s7 + $0x40] sm:$0xff] (!%p219_p9)  ;;  %v263_v58 = vld [vmem:[%s881_s7 + $0x50] sm:$0xff] (!%p219_p9)  ;;  %v270_v61 = vld [vmem:[%s881_s7 + $0x88] sm:$0xff] (!%p219_p9) }
  0x30   : > { %657 = vmatpush1.bf16.msra.mxu0 %v656_v45  ;;  %v265_v57 = vld [vmem:[%s881_s7 + $0x60] sm:$0xff]  ;;  %v267_v60 = vld [vmem:[%s881_s7 + $0x70] sm:$0xff]  ;;  %v274_v62 = vld [vmem:[%s881_s7 + $0xa8] sm:$0xff]  ;;  %296 = vperm.xlu0 %712, %v286_v39   ;;  %s653_s12 = sshll.u32 (%p790_p5), %s629_s15, 5 }
  0x31   : > { %673 = vmatpush1.bf16.msra.mxu1 %v672_v50  ;;  %v660_v59 = vpack.c.bf16 %v265_v57, %v261_v56  ;;  %659 = vmatprep.subr.bf16.mxu0 %v658_v54  ;;  %v676_v63 = vpack.c.bf16 %v267_v60, %v263_v58  ;;  %v662_v0 = vpack.c.bf16 %v274_v62, %v270_v61  ;;  %v272_v1 = vld [vmem:[%s881_s7 + $0x98] sm:$0xff]  ;;  %v269_v3 = vld [vmem:[%s881_s7 + $0x80] sm:$0xff]  ;;  %v271_v6 = vld [vmem:[%s881_s7 + $0x90] sm:$0xff]  ;;  %s525_s20 = scalar_lea.vmem (%p790_p5), %s1003_s3, %s653_s12 }
  0x32   : > { %675 = vmatprep.subr.bf16.mxu1 %v674_v55  ;;  %v276_v2 = vld [vmem:[%s881_s7 + $0xb8] sm:$0xff]  ;;  %v273_v5 = vld [vmem:[%s881_s7 + $0xa0] sm:$0xff]  ;;  %v275_v7 = vld [vmem:[%s881_s7 + $0xb0] sm:$0xff]  ;;  %306 = vperm.xlu1 %713, %v288_v49  }
  0x33   : > { %v678_v4 = vpack.c.bf16 %v276_v2, %v272_v1  ;;  %v664_v8 = vpack.c.bf16 %v273_v5, %v269_v3  ;;  %v278_v9 = vld [vmem:[%s881_s7 + $0xc8] sm:$0xff]  ;;  %v280_v11 = vld [vmem:[%s881_s7 + $0xd8] sm:$0xff]  ;;  %v680_v12 = vpack.c.bf16 %v275_v7, %v271_v6  ;;  %v277_v15 = vld [vmem:[%s881_s7 + $0xc0] sm:$0xff] }
  0x34   : > { %661 = vmatpush1.bf16.msra.mxu0 %v660_v59  ;;  %v282_v10 = vld [vmem:[%s881_s7 + $0xe8] sm:$0xff]  ;;  %v284_v14 = vld [vmem:[%s881_s7 + $0xf8] sm:$0xff]  ;;  %v281_v16 = vld [vmem:[%s881_s7 + $0xe0] sm:$0xff] }
  0x35   : > { %677 = vmatpush1.bf16.msra.mxu1 %v676_v63  ;;  %663 = vmatprep.subr.bf16.mxu0 %v662_v0  ;;  %v666_v13 = vpack.c.bf16 %v282_v10, %v278_v9  ;;  %v682_v17 = vpack.c.bf16 %v284_v14, %v280_v11  ;;  %v279_v18 = vld [vmem:[%s881_s7 + $0xd0] sm:$0xff]  ;;  %v668_v20 = vpack.c.bf16 %v281_v16, %v277_v15 }
  0x36   : > { %679 = vmatprep.subr.bf16.mxu1 %v678_v4  ;;  %v283_v19 = vld [vmem:[%s881_s7 + $0xf0] sm:$0xff] }
  0x37   : > { %v684_v21 = vpack.c.bf16 %v283_v19, %v279_v18 }
  0x38   : > { %665 = vmatpush1.bf16.msra.mxu0 %v664_v8 }
  0x39   : > { %681 = vmatpush1.bf16.msra.mxu1 %v680_v12  ;;  %667 = vmatprep.subr.bf16.mxu0 %v666_v13 }
  0x3a   : > { %683 = vmatprep.subr.bf16.mxu1 %v682_v17 }
  0x3c   : > { %669 = vmatpush1.bf16.msra.mxu0 %v668_v20 }
  0x3d   : > { %685 = vmatpush1.bf16.msra.mxu1 %v684_v21 }
  0x3f   : > { %639 = vmatmul.mubr.msk.f32.vlgmr.msra.gmra.mrb[0].mxu0 %vm309_vm0, %v249_v22 }
  0x40   : > { %643 = vmatmul.mubr.msk.f32.vlgmr.msra.gmra.mrb[0].mxu1 %vm309_vm0, %v249_v22  ;;  %392 = vmatprep.mubr.f32.mxu0 %v738_v32 }
  0x41   : > { %481 = vmatprep.mubr.f32.mxu1 %v738_v32 }
  0x43   : > { %640 = vmatmul.mubr.msk.f32.gmra.mrb[2].mxu0 %vm309_vm0, %v250_v23 }
  0x44   : > { %644 = vmatmul.mubr.msk.f32.gmra.mrb[2].mxu1 %vm309_vm0, %v250_v23  ;;  %398 = vmatprep.mubr.f32.mxu0 %v738_v32 }
  0x45   : > { %487 = vmatprep.mubr.f32.mxu1 %v738_v32 }
  0x47   : > { %641 = vmatmul.mubr.msk.f32.gmra.mrb[4].mxu0 %vm309_vm0, %v251_v24 }
  0x48   : > { %645 = vmatmul.mubr.msk.f32.gmra.mrb[4].mxu1 %vm309_vm0, %v251_v24  ;;  %404 = vmatprep.mubr.f32.mxu0 %v738_v32 }
  0x49   : > { %493 = vmatprep.mubr.f32.mxu1 %v738_v32 }
  0x4b   : > { %642 = vmatmul.mubr.msk.f32.gmra.mrb[6].mxu0 %vm309_vm0, %v252_v25 }
  0x4c   : > { %646 = vmatmul.mubr.msk.f32.gmra.mrb[6].mxu1 %vm309_vm0, %v252_v25 }
  0xaa   : > { %v292_v26 = vpop.permute.xlu0 %291  ;;  %v302_v41 = vpop.permute.xlu1 %301 }
  0xaf   : > { %v297_v35 = vpop.permute.xlu0 %296 }
  0xb1   : > { %v307_v53 = vpop.permute.xlu1 %306 }
 0x112   : > { %v388_v27 = vpop.f32.mrb[0].mxu0 }
 0x113   : > { %v389_v28 = vadd.f32 %v388_v27, %v292_v26  ;;  %v477_v29 = vpop.f32.mrb[0].mxu1  ;;  %v390_v30 = vpop.f32.mrb[1].mxu0 }
 0x114   : > { %v478_v31 = vadd.f32 %v477_v29, %v292_v26  ;;  %v391_v33 = vadd.f32 %v390_v30, %v292_v26  ;;  %v479_v34 = vpop.f32.mrb[1].mxu1 }
 0x115   : > { %500 = vst [vmem:[%s949_s29] sm:$0xff] %v389_v28  ;;  %v480_v32 = vadd.f32 %v479_v34, %v292_v26 }
 0x116   : > { %502 = vst [vmem:[%s949_s29 + $0x10] sm:$0xff] %v478_v31  ;;  %501 = vst [vmem:[%s949_s29 + $0x8] sm:$0xff] %v391_v33  ;;  %v394_v36 = vpop.f32.mrb[2].mxu0 }
 0x117   : > { %503 = vst [vmem:[%s949_s29 + $0x18] sm:$0xff] %v480_v32  ;;  %v395_v37 = vadd.f32 %v394_v36, %v297_v35  ;;  %v483_v38 = vpop.f32.mrb[2].mxu1  ;;  %v396_v39 = vpop.f32.mrb[3].mxu0 }
 0x118   : > { %v484_v40 = vadd.f32 %v483_v38, %v297_v35  ;;  %v397_v42 = vadd.f32 %v396_v39, %v297_v35  ;;  %v485_v43 = vpop.f32.mrb[3].mxu1 }
 0x119   : > { %504 = vst [vmem:[%s949_s29 + $0x20] sm:$0xff] %v395_v37  ;;  %v486_v44 = vadd.f32 %v485_v43, %v297_v35 }
 0x11a   : > { %506 = vst [vmem:[%s949_s29 + $0x30] sm:$0xff] %v484_v40  ;;  %505 = vst [vmem:[%s949_s29 + $0x28] sm:$0xff] %v397_v42  ;;  %v400_v45 = vpop.f32.mrb[4].mxu0 }
 0x11b   : > { %507 = vst [vmem:[%s949_s29 + $0x38] sm:$0xff] %v486_v44  ;;  %v401_v46 = vadd.f32 %v400_v45, %v302_v41  ;;  %v489_v47 = vpop.f32.mrb[4].mxu1  ;;  %v402_v48 = vpop.f32.mrb[5].mxu0 }
 0x11c   : > { %v490_v49 = vadd.f32 %v489_v47, %v302_v41  ;;  %v403_v50 = vadd.f32 %v402_v48, %v302_v41  ;;  %v491_v51 = vpop.f32.mrb[5].mxu1  ;;  %v538_v62 = vld [vmem:[%s949_s29] sm:$0xff] (%p790_p5) }
 0x11d   : > { %508 = vst [vmem:[%s949_s29 + $0x40] sm:$0xff] %v401_v46  ;;  %v492_v52 = vadd.f32 %v491_v51, %v302_v41  ;;  %522 = sbr.rel (!%p790_p5) target bundleno = 300 (0x12c), region = 59  ;;  %v540_v63 = vld [vmem:[%s949_s29 + $0x8] sm:$0xff] (%p790_p5)  ;;  %v542_v0 = vld [vmem:[%s949_s29 + $0x10] sm:$0xff] (%p790_p5)  ;;  %539 = vst [vmem:[%s525_s20] sm:$0xff] (%p790_p5), %v538_v62 }
 0x11e   : > { %510 = vst [vmem:[%s949_s29 + $0x50] sm:$0xff] %v490_v49  ;;  %509 = vst [vmem:[%s949_s29 + $0x48] sm:$0xff] %v403_v50  ;;  %v406_v54 = vpop.f32.mrb[6].mxu0  ;;  %v544_v1 = vld [vmem:[%s949_s29 + $0x18] sm:$0xff] (%p790_p5) }
 0x11f   : > { %511 = vst [vmem:[%s949_s29 + $0x58] sm:$0xff] %v492_v52  ;;  %v407_v55 = vadd.f32 %v406_v54, %v307_v53  ;;  %v495_v56 = vpop.f32.mrb[6].mxu1  ;;  %v408_v57 = vpop.f32.mrb[7].mxu0  ;;  %541 = vst [vmem:[%s525_s20 + $0x8] sm:$0xff] (%p790_p5), %v540_v63 }
 0x120   : > { %v496_v58 = vadd.f32 %v495_v56, %v307_v53  ;;  %v409_v59 = vadd.f32 %v408_v57, %v307_v53  ;;  %v497_v60 = vpop.f32.mrb[7].mxu1  ;;  %v546_v2 = vld [vmem:[%s949_s29 + $0x20] sm:$0xff] (%p790_p5)  ;;  %543 = vst [vmem:[%s525_s20 + $0x10] sm:$0xff] (%p790_p5), %v542_v0  ;;  %545 = vst [vmem:[%s525_s20 + $0x18] sm:$0xff] (%p790_p5), %v544_v1 }
 0x121   : > { %512 = vst [vmem:[%s949_s29 + $0x60] sm:$0xff] %v407_v55  ;;  %v498_v61 = vadd.f32 %v497_v60, %v307_v53  ;;  %v548_v3 = vld [vmem:[%s949_s29 + $0x28] sm:$0xff] (%p790_p5)  ;;  %547 = vst [vmem:[%s525_s20 + $0x40] sm:$0xff] (%p790_p5), %v546_v2  ;;  %v550_v4 = vld [vmem:[%s949_s29 + $0x30] sm:$0xff] (%p790_p5) }
 0x122   : > { %514 = vst [vmem:[%s949_s29 + $0x70] sm:$0xff] %v496_v58  ;;  %513 = vst [vmem:[%s949_s29 + $0x68] sm:$0xff] %v409_v59  ;;  %v552_v5 = vld [vmem:[%s949_s29 + $0x38] sm:$0xff] (%p790_p5) }
 0x123   : > { %515 = vst [vmem:[%s949_s29 + $0x78] sm:$0xff] %v498_v61  ;;  %549 = vst [vmem:[%s525_s20 + $0x48] sm:$0xff] (%p790_p5), %v548_v3 }
 0x124   : > { %v554_v6 = vld [vmem:[%s949_s29 + $0x40] sm:$0xff]  ;;  %551 = vst [vmem:[%s525_s20 + $0x50] sm:$0xff] %v550_v4  ;;  %553 = vst [vmem:[%s525_s20 + $0x58] sm:$0xff] %v552_v5 }
 0x125   : > { %555 = vst [vmem:[%s525_s20 + $0x80] sm:$0xff] %v554_v6  ;;  %v556_v7 = vld [vmem:[%s949_s29 + $0x48] sm:$0xff]  ;;  %v558_v8 = vld [vmem:[%s949_s29 + $0x50] sm:$0xff] }
 0x126   : > { %v560_v9 = vld [vmem:[%s949_s29 + $0x58] sm:$0xff]  ;;  %557 = vst [vmem:[%s525_s20 + $0x88] sm:$0xff] %v556_v7  ;;  %559 = vst [vmem:[%s525_s20 + $0x90] sm:$0xff] %v558_v8 }
 0x127   : > { %561 = vst [vmem:[%s525_s20 + $0x98] sm:$0xff] %v560_v9 }
 0x128   : > { %v562_v10 = vld [vmem:[%s949_s29 + $0x60] sm:$0xff] }
 0x129   : > { %v564_v11 = vld [vmem:[%s949_s29 + $0x68] sm:$0xff]  ;;  %v566_v12 = vld [vmem:[%s949_s29 + $0x70] sm:$0xff]  ;;  %563 = vst [vmem:[%s525_s20 + $0xc0] sm:$0xff] %v562_v10 }
 0x12a   : > { %565 = vst [vmem:[%s525_s20 + $0xc8] sm:$0xff] %v564_v11  ;;  %567 = vst [vmem:[%s525_s20 + $0xd0] sm:$0xff] %v566_v12  ;;  %v568_v13 = vld [vmem:[%s949_s29 + $0x78] sm:$0xff] }
 0x12b   : > { %569 = vst [vmem:[%s525_s20 + $0xd8] sm:$0xff] %v568_v13 }
 0x12c PF: > { %p10_p10 = scmp.ge.s32.totalorder %s777_s16, 4   ;;  %s1005_s12 = smov %s732_s13 }
 0x12d   : > { %s1006_s13 = smov %s788_s19  ;;  %s1007_s14 = smov %s777_s16 }
 0x12e   :  { %12 = sbr.rel (!%p10_p10) target bundleno = 2 (0x2), region = 113 }

</bundles_post_ra>
